<compile_context>
chip_gen: v7x
topology: tpu7x:2x2x1
jax: 0.10.0
libtpu: 0.0.40
codegen_flags: <defaults>
</compile_context>

<pallas_src>
import jax
import jax.numpy as jnp
from jax.experimental import pallas as pl
from jax.experimental.pallas import tpu as pltpu


def _attn_kernel(x_ref, wq_ref, wk_ref, wv_ref, wp_ref, b_ref, o_ref):
    """One grid step: a block of `Bb` batch rows, all heads batched.

    x_ref : (Bb, N, C)   activations (f32 or bf16)
    wq_ref: (H, C, hd)   per-head Q weights, softmax scale pre-folded
    wk_ref: (H, C, hd)   per-head K weights
    wv_ref: (H, C, hd)   per-head V weights
    wp_ref: (H, hd, C)   per-head slices of the output projection
    b_ref : (1, C)       output-projection bias (f32)
    o_ref : (Bb, N, C)   output (f32)
    """
    Bb, N, C = o_ref.shape
    H = wq_ref.shape[0]
    mxu_dt = wq_ref.dtype                     # operand dtype fed to the MXU

    # Weights / bias loaded once per grid step (hoisted out of the batch loop).
    wq = wq_ref[...]
    wk = wk_ref[...]
    wv = wv_ref[...]
    wp = wp_ref[...]
    bias = b_ref[...]                         # (1, C), f32

    # Bb is small and static; this loop unrolls at trace time.  Everything
    # inside is batched over the head axis (no tiny per-head dots, no
    # lane-granular qkv slicing, no concatenate, no transposes).
    for b in range(Bb):
        xb = x_ref[b].astype(mxu_dt)                        # (N, C)
        xh = jnp.broadcast_to(xb[None], (H, N, C))          # (H, N, C)

        # Per-head projections as head-batched matmuls, f32 accumulation.
        # q comes out pre-scaled (softmax scale folded into wq).
        q = jnp.einsum("hnc,hcd->hnd", xh, wq,
                       preferred_element_type=jnp.float32)  # (H, N, hd)
        k = jnp.einsum("hnc,hcd->hnd", xh, wk,
                       preferred_element_type=jnp.float32)
        v = jnp.einsum("hnc,hcd->hnd", xh, wv,
                       preferred_element_type=jnp.float32)

        # Scores: contract head_dim of q against head_dim of k directly
        # (batched dot_general in natural output order; no materialized k^T).
        s = jnp.einsum("hnd,hmd->hnm",
                       q.astype(mxu_dt), k.astype(mxu_dt),
                       preferred_element_type=jnp.float32)  # (H, N, N)

        # Softmax in f32 (max-subtracted); denominator reciprocal on the EUP.
        s_max = jnp.max(s, axis=-1, keepdims=True)
        p = jnp.exp(s - s_max)
        p = p * pl.reciprocal(jnp.sum(p, axis=-1, keepdims=True), approx=True)

        # attn @ v, head-batched.
        o = jnp.einsum("hnm,hmd->hnd",
                       p.astype(mxu_dt), v.astype(mxu_dt),
                       preferred_element_type=jnp.float32)  # (H, N, hd)

        # Output projection: per-head partials summed over heads (equivalent
        # to concat-over-heads followed by (N, C) @ (C, C), but without the
        # in-kernel concat/relayout).
        y = jnp.einsum("hnd,hdc->hnc", o.astype(mxu_dt), wp,
                       preferred_element_type=jnp.float32)  # (H, N, C)
        y = jnp.sum(y, axis=0) + bias                        # (N, C)

        # NOTE: for the toy C=32 this store is sub-128-lane (masked vst);
        # real ViT widths (C >= 128) are already lane-dense.
        o_ref[b] = y.astype(o_ref.dtype)


def prepare_attention_weights(w_qkv, w_proj, b_proj, *, num_heads,
                              qk_scale=None, mxu_dtype=jnp.float32):
    """One-time weight transform (outside the kernel, not per call).

    w_qkv : (C, 3C)  such that qkv = x @ w_qkv   (PyTorch weight.T)
    w_proj: (C, C)   such that y   = out @ w_proj (PyTorch weight.T)
    b_proj: (1, C)
    Returns (wq_h, wk_h, wv_h, wp_h, bias): per-head weight tensors with the
    softmax scale folded into wq_h, cast to `mxu_dtype` (bf16 recommended on
    v6e/v7x; kernel accumulation stays f32 either way).
    """
    C = w_proj.shape[0]
    assert C % num_heads == 0
    hd = C // num_heads
    scale = qk_scale if qk_scale is not None else hd ** (-0.5)

    def to_heads(w):   # (C, C) -> (H, C, hd); head h uses columns h*hd:(h+1)*hd
        return w.reshape(C, num_heads, hd).transpose(1, 0, 2)

    wq_h = to_heads(w_qkv[:, :C] * scale).astype(mxu_dtype)    # scale folded in
    wk_h = to_heads(w_qkv[:, C:2 * C]).astype(mxu_dtype)
    wv_h = to_heads(w_qkv[:, 2 * C:]).astype(mxu_dtype)
    wp_h = w_proj.reshape(num_heads, hd, C).astype(mxu_dtype)  # (H, hd, C)
    bias = b_proj.reshape(1, C).astype(jnp.float32)
    return wq_h, wk_h, wv_h, wp_h, bias


def attention_pallas(x, wq_h, wk_h, wv_h, wp_h, bias, *, batch_block=None):
    """x: (B, N, C); remaining args from prepare_attention_weights."""
    B, N, C = x.shape
    H, _, hd = wq_h.shape
    assert H * hd == C
    if batch_block is None:
        batch_block = B          # tiny case: single grid step, no pipeline
    assert B % batch_block == 0
    nb = B // batch_block

    return pl.pallas_call(
        _attn_kernel,
        out_shape=jax.ShapeDtypeStruct((B, N, C), jnp.float32),
        grid_spec=pltpu.PrefetchScalarGridSpec(
            num_scalar_prefetch=0,
            grid=(nb,),
            in_specs=[
                pl.BlockSpec((batch_block, N, C), lambda i: (i, 0, 0)),  # x
                pl.BlockSpec((H, C, hd), lambda i: (0, 0, 0)),           # wq
                pl.BlockSpec((H, C, hd), lambda i: (0, 0, 0)),           # wk
                pl.BlockSpec((H, C, hd), lambda i: (0, 0, 0)),           # wv
                pl.BlockSpec((H, hd, C), lambda i: (0, 0, 0)),           # wp
                pl.BlockSpec((1, C), lambda i: (0, 0)),                  # bias
            ],
            out_specs=pl.BlockSpec((batch_block, N, C), lambda i: (i, 0, 0)),
        ),
        # nb == 1 -> single step (no per-step overhead); for larger B the
        # batch-block axis pipelines and shards across v7x's two TensorCores.
        compiler_params=pltpu.CompilerParams(
            dimension_semantics=("parallel",)),
    )(x, wq_h, wk_h, wv_h, wp_h, bias)


def attention_ref(x, w_qkv, w_proj, b_proj, *, num_heads, operand_dtype=None):
    """Pure-JAX reference mirroring the PyTorch forward (f32 accumulation)."""
    B, N, C = x.shape
    hd = C // num_heads
    scale = hd ** (-0.5)
    dt = x.dtype if operand_dtype is None else operand_dtype
    qkv = jnp.dot(x.astype(dt), w_qkv.astype(dt),
                  preferred_element_type=jnp.float32)        # (B, N, 3C)
    qkv = qkv.reshape(B, N, 3, num_heads, hd).transpose(2, 0, 3, 1, 4)
    q, k, v = qkv[0], qkv[1], qkv[2]                         # (B, H, N, hd)
    s = jnp.einsum("bhnd,bhmd->bhnm", q.astype(dt), k.astype(dt),
                   preferred_element_type=jnp.float32) * scale
    p = jax.nn.softmax(s, axis=-1)
    o = jnp.einsum("bhnm,bhmd->bhnd", p.astype(dt), v.astype(dt),
                   preferred_element_type=jnp.float32)
    out = o.transpose(0, 2, 1, 3).reshape(B, N, C)
    return jnp.dot(out.astype(dt), w_proj.astype(dt),
                   preferred_element_type=jnp.float32) + b_proj


if __name__ == "__main__":
    # Small shapes consistent with the module: B=2, N=8 (seq), C=32 (dim),
    # num_heads=8 -> head_dim=4.
    B, N, C, H = 2, 8, 32, 8

    key = jax.random.PRNGKey(0)
    kx, kqkv, kproj, kb = jax.random.split(key, 4)

    x = jax.random.normal(kx, (B, N, C), dtype=jnp.float32)
    # PyTorch nn.Linear stores (out, in); these are pre-transposed to
    # (in, out) so the forward is x @ W.  qkv has no bias (qkv_bias=False).
    w_qkv = jax.random.normal(kqkv, (C, 3 * C), dtype=jnp.float32) * (C ** -0.5)
    w_proj = jax.random.normal(kproj, (C, C), dtype=jnp.float32) * (C ** -0.5)
    b_proj = jax.random.normal(kb, (1, C), dtype=jnp.float32) * 0.01

    # TODO(synk): attn_drop / proj_drop are nn.Dropout with default p=0.0
    # (identity in eval mode) and are intentionally not implemented.

    # --- f32 MXU operands (matches the PyTorch math) ------------------------
    wq_h, wk_h, wv_h, wp_h, bias = prepare_attention_weights(
        w_qkv, w_proj, b_proj, num_heads=H, mxu_dtype=jnp.float32)
    out = attention_pallas(x, wq_h, wk_h, wv_h, wp_h, bias)
    out = jax.block_until_ready(out)
    ref = attention_ref(x, w_qkv, w_proj, b_proj, num_heads=H)
    assert out.shape == (B, N, C)
    assert jnp.allclose(out, ref, atol=1e-2, rtol=1e-2), \
        "f32 kernel mismatch vs reference"

    # --- bf16 MXU operands, f32 accumulation (v6e/v7x recommendation) -------
    wq_b, wk_b, wv_b, wp_b, bias_b = prepare_attention_weights(
        w_qkv, w_proj, b_proj, num_heads=H, mxu_dtype=jnp.bfloat16)
    out_bf16 = attention_pallas(x.astype(jnp.bfloat16),
                                wq_b, wk_b, wv_b, wp_b, bias_b)
    out_bf16 = jax.block_until_ready(out_bf16)
    ref_bf16 = attention_ref(x, w_qkv, w_proj, b_proj, num_heads=H,
                             operand_dtype=jnp.bfloat16)
    assert jnp.allclose(out_bf16, ref_bf16, atol=7.5e-2, rtol=7.5e-2), \
        "bf16 kernel mismatch vs bf16-operand reference"

    print("KERNEL_OK")
</pallas_src>

<mosaic_0001>
module attributes {stable_mosaic.version = 11 : i64} {
  func.func @_attn_kernel(%arg0: i32, %arg1: memref<2x8x32xf32, #tpu.memory_space<vmem>>, %arg2: memref<8x32x4xf32, #tpu.memory_space<vmem>>, %arg3: memref<8x32x4xf32, #tpu.memory_space<vmem>>, %arg4: memref<8x32x4xf32, #tpu.memory_space<vmem>>, %arg5: memref<8x4x32xf32, #tpu.memory_space<vmem>>, %arg6: memref<1x32xf32, #tpu.memory_space<vmem>>, %arg7: memref<2x8x32xf32, #tpu.memory_space<vmem>>) attributes {dimension_semantics = [#tpu.dimension_semantics<parallel>], iteration_bounds = array<i64: 1>, scalar_prefetch = 0 : i64, scratch_operands = 0 : i64, tpu.core_type = #tpu.core_type<tc>, window_params = [{transform_indices = @transform_0, window_bounds = array<i64: 2, 8, 32>}, {pipeline_mode = #tpu.pipeline_mode<synchronous>, transform_indices = @transform_1, window_bounds = array<i64: 8, 32, 4>}, {pipeline_mode = #tpu.pipeline_mode<synchronous>, transform_indices = @transform_2, window_bounds = array<i64: 8, 32, 4>}, {pipeline_mode = #tpu.pipeline_mode<synchronous>, transform_indices = @transform_3, window_bounds = array<i64: 8, 32, 4>}, {pipeline_mode = #tpu.pipeline_mode<synchronous>, transform_indices = @transform_4, window_bounds = array<i64: 8, 4, 32>}, {pipeline_mode = #tpu.pipeline_mode<synchronous>, transform_indices = @transform_5, window_bounds = array<i64: 1, 32>}, {transform_indices = @transform_6, window_bounds = array<i64: 2, 8, 32>}]} {
    %c0 = arith.constant 0 : index
    %c0_0 = arith.constant 0 : index
    %c0_1 = arith.constant 0 : index
    %0 = vector.load %arg2[%c0, %c0_0, %c0_1] : memref<8x32x4xf32, #tpu.memory_space<vmem>>, vector<8x32x4xf32>
    %c0_2 = arith.constant 0 : index
    %c0_3 = arith.constant 0 : index
    %c0_4 = arith.constant 0 : index
    %1 = vector.load %arg3[%c0_2, %c0_3, %c0_4] : memref<8x32x4xf32, #tpu.memory_space<vmem>>, vector<8x32x4xf32>
    %c0_5 = arith.constant 0 : index
    %c0_6 = arith.constant 0 : index
    %c0_7 = arith.constant 0 : index
    %2 = vector.load %arg4[%c0_5, %c0_6, %c0_7] : memref<8x32x4xf32, #tpu.memory_space<vmem>>, vector<8x32x4xf32>
    %c0_8 = arith.constant 0 : index
    %c0_9 = arith.constant 0 : index
    %c0_10 = arith.constant 0 : index
    %3 = vector.load %arg5[%c0_8, %c0_9, %c0_10] : memref<8x4x32xf32, #tpu.memory_space<vmem>>, vector<8x4x32xf32>
    %c0_11 = arith.constant 0 : index
    %c0_12 = arith.constant 0 : index
    %4 = vector.load %arg6[%c0_11, %c0_12] : memref<1x32xf32, #tpu.memory_space<vmem>>, vector<1x32xf32>
    %c0_13 = arith.constant 0 : index
    %c0_14 = arith.constant 0 : index
    %c0_15 = arith.constant 0 : index
    %5 = vector.load %arg1[%c0_13, %c0_14, %c0_15] : memref<2x8x32xf32, #tpu.memory_space<vmem>>, vector<1x8x32xf32>
    %6 = vector.shape_cast %5 : vector<1x8x32xf32> to vector<8x32xf32>
    %7 = vector.shape_cast %6 : vector<8x32xf32> to vector<1x8x32xf32>
    %8 = vector.shape_cast %7 : vector<1x8x32xf32> to vector<1x8x32xf32>
    %9 = vector.broadcast %8 : vector<1x8x32xf32> to vector<8x8x32xf32>
    "tpu.trace_start"() <{level = 10 : i32, message = "hnc,hcd->hnd"}> : () -> ()
    %cst = arith.constant dense<0.000000e+00> : vector<8x8x4xf32>
    %10 = tpu.matmul %9, %0, %cst {dimension_numbers = #tpu.dot_dimension_numbers<[2], [1], [1], [2], [0, 0, 0, 1, 1, 2], [0], [0]>} : vector<8x8x32xf32>, vector<8x32x4xf32>, vector<8x8x4xf32> -> vector<8x8x4xf32>
    %cst_16 = arith.constant dense<0.000000e+00> : vector<8x8x4xf32>
    %11 = tpu.matmul %9, %1, %cst_16 {dimension_numbers = #tpu.dot_dimension_numbers<[2], [1], [1], [2], [0, 0, 0, 1, 1, 2], [0], [0]>} : vector<8x8x32xf32>, vector<8x32x4xf32>, vector<8x8x4xf32> -> vector<8x8x4xf32>
    %cst_17 = arith.constant dense<0.000000e+00> : vector<8x8x4xf32>
    %12 = tpu.matmul %9, %2, %cst_17 {dimension_numbers = #tpu.dot_dimension_numbers<[2], [1], [1], [2], [0, 0, 0, 1, 1, 2], [0], [0]>} : vector<8x8x32xf32>, vector<8x32x4xf32>, vector<8x8x4xf32> -> vector<8x8x4xf32>
    "tpu.trace_stop"() : () -> ()
    "tpu.trace_start"() <{level = 10 : i32, message = "hnd,hmd->hnm"}> : () -> ()
    %cst_18 = arith.constant dense<0.000000e+00> : vector<8x8x8xf32>
    %13 = tpu.matmul %10, %11, %cst_18 {dimension_numbers = #tpu.dot_dimension_numbers<[2], [2], [1], [1], [0, 0, 0, 1, 1, 1], [0], [0]>} : vector<8x8x4xf32>, vector<8x8x4xf32>, vector<8x8x8xf32> -> vector<8x8x8xf32>
    "tpu.trace_stop"() : () -> ()
    %cst_19 = arith.constant dense<0xFF800000> : vector<8x8xf32>
    %14 = vector.multi_reduction <maximumf>, %13, %cst_19 [2] : vector<8x8x8xf32> to vector<8x8xf32>
    %15 = vector.shape_cast %14 : vector<8x8xf32> to vector<8x8x1xf32>
    %16 = vector.broadcast %15 : vector<8x8x1xf32> to vector<8x8x8xf32>
    %17 = arith.subf %13, %16 : vector<8x8x8xf32>
    %18 = math.exp %17 : vector<8x8x8xf32>
    %cst_20 = arith.constant dense<0.000000e+00> : vector<8x8xf32>
    %19 = vector.multi_reduction <add>, %18, %cst_20 [2] : vector<8x8x8xf32> to vector<8x8xf32>
    %20 = vector.shape_cast %19 : vector<8x8xf32> to vector<8x8x1xf32>
    %21 = tpu.reciprocal %20 {approx = true} : vector<8x8x1xf32> -> vector<8x8x1xf32>
    %22 = vector.broadcast %21 : vector<8x8x1xf32> to vector<8x8x8xf32>
    %23 = arith.mulf %18, %22 : vector<8x8x8xf32>
    "tpu.trace_start"() <{level = 10 : i32, message = "hnm,hmd->hnd"}> : () -> ()
    %cst_21 = arith.constant dense<0.000000e+00> : vector<8x8x4xf32>
    %24 = tpu.matmul %23, %12, %cst_21 {dimension_numbers = #tpu.dot_dimension_numbers<[2], [1], [1], [2], [0, 0, 0, 1, 1, 2], [0], [0]>} : vector<8x8x8xf32>, vector<8x8x4xf32>, vector<8x8x4xf32> -> vector<8x8x4xf32>
    "tpu.trace_stop"() : () -> ()
    "tpu.trace_start"() <{level = 10 : i32, message = "hnd,hdc->hnc"}> : () -> ()
    %cst_22 = arith.constant dense<0.000000e+00> : vector<8x8x32xf32>
    %25 = tpu.matmul %24, %3, %cst_22 {dimension_numbers = #tpu.dot_dimension_numbers<[2], [1], [1], [2], [0, 0, 0, 1, 1, 2], [0], [0]>} : vector<8x8x4xf32>, vector<8x4x32xf32>, vector<8x8x32xf32> -> vector<8x8x32xf32>
    "tpu.trace_stop"() : () -> ()
    %cst_23 = arith.constant dense<0.000000e+00> : vector<8x32xf32>
    %26 = vector.multi_reduction <add>, %25, %cst_23 [0] : vector<8x8x32xf32> to vector<8x32xf32>
    %27 = vector.broadcast %4 : vector<1x32xf32> to vector<8x32xf32>
    %28 = arith.addf %26, %27 : vector<8x32xf32>
    %c0_24 = arith.constant 0 : index
    %c0_25 = arith.constant 0 : index
    %c0_26 = arith.constant 0 : index
    %29 = vector.load %arg7[%c0_24, %c0_25, %c0_26] : memref<2x8x32xf32, #tpu.memory_space<vmem>>, vector<1x8x32xf32>
    %30 = vector.shape_cast %29 : vector<1x8x32xf32> to vector<8x32xf32>
    %31 = vector.shape_cast %28 : vector<8x32xf32> to vector<1x8x32xf32>
    tpu.vector_store %arg7[%c0_24, %c0_25, %c0_26], %31 {strides = array<i32>} : memref<2x8x32xf32, #tpu.memory_space<vmem>>, vector<1x8x32xf32>,
    %c1 = arith.constant 1 : index
    %c0_27 = arith.constant 0 : index
    %c0_28 = arith.constant 0 : index
    %32 = vector.load %arg1[%c1, %c0_27, %c0_28] : memref<2x8x32xf32, #tpu.memory_space<vmem>>, vector<1x8x32xf32>
    %33 = vector.shape_cast %32 : vector<1x8x32xf32> to vector<8x32xf32>
    %34 = vector.shape_cast %33 : vector<8x32xf32> to vector<1x8x32xf32>
    %35 = vector.shape_cast %34 : vector<1x8x32xf32> to vector<1x8x32xf32>
    %36 = vector.broadcast %35 : vector<1x8x32xf32> to vector<8x8x32xf32>
    "tpu.trace_start"() <{level = 10 : i32, message = "hnc,hcd->hnd"}> : () -> ()
    %cst_29 = arith.constant dense<0.000000e+00> : vector<8x8x4xf32>
    %37 = tpu.matmul %36, %0, %cst_29 {dimension_numbers = #tpu.dot_dimension_numbers<[2], [1], [1], [2], [0, 0, 0, 1, 1, 2], [0], [0]>} : vector<8x8x32xf32>, vector<8x32x4xf32>, vector<8x8x4xf32> -> vector<8x8x4xf32>
    %cst_30 = arith.constant dense<0.000000e+00> : vector<8x8x4xf32>
    %38 = tpu.matmul %36, %1, %cst_30 {dimension_numbers = #tpu.dot_dimension_numbers<[2], [1], [1], [2], [0, 0, 0, 1, 1, 2], [0], [0]>} : vector<8x8x32xf32>, vector<8x32x4xf32>, vector<8x8x4xf32> -> vector<8x8x4xf32>
    %cst_31 = arith.constant dense<0.000000e+00> : vector<8x8x4xf32>
    %39 = tpu.matmul %36, %2, %cst_31 {dimension_numbers = #tpu.dot_dimension_numbers<[2], [1], [1], [2], [0, 0, 0, 1, 1, 2], [0], [0]>} : vector<8x8x32xf32>, vector<8x32x4xf32>, vector<8x8x4xf32> -> vector<8x8x4xf32>
    "tpu.trace_stop"() : () -> ()
    "tpu.trace_start"() <{level = 10 : i32, message = "hnd,hmd->hnm"}> : () -> ()
    %cst_32 = arith.constant dense<0.000000e+00> : vector<8x8x8xf32>
    %40 = tpu.matmul %37, %38, %cst_32 {dimension_numbers = #tpu.dot_dimension_numbers<[2], [2], [1], [1], [0, 0, 0, 1, 1, 1], [0], [0]>} : vector<8x8x4xf32>, vector<8x8x4xf32>, vector<8x8x8xf32> -> vector<8x8x8xf32>
    "tpu.trace_stop"() : () -> ()
    %cst_33 = arith.constant dense<0xFF800000> : vector<8x8xf32>
    %41 = vector.multi_reduction <maximumf>, %40, %cst_33 [2] : vector<8x8x8xf32> to vector<8x8xf32>
    %42 = vector.shape_cast %41 : vector<8x8xf32> to vector<8x8x1xf32>
    %43 = vector.broadcast %42 : vector<8x8x1xf32> to vector<8x8x8xf32>
    %44 = arith.subf %40, %43 : vector<8x8x8xf32>
    %45 = math.exp %44 : vector<8x8x8xf32>
    %cst_34 = arith.constant dense<0.000000e+00> : vector<8x8xf32>
    %46 = vector.multi_reduction <add>, %45, %cst_34 [2] : vector<8x8x8xf32> to vector<8x8xf32>
    %47 = vector.shape_cast %46 : vector<8x8xf32> to vector<8x8x1xf32>
    %48 = tpu.reciprocal %47 {approx = true} : vector<8x8x1xf32> -> vector<8x8x1xf32>
    %49 = vector.broadcast %48 : vector<8x8x1xf32> to vector<8x8x8xf32>
    %50 = arith.mulf %45, %49 : vector<8x8x8xf32>
    "tpu.trace_start"() <{level = 10 : i32, message = "hnm,hmd->hnd"}> : () -> ()
    %cst_35 = arith.constant dense<0.000000e+00> : vector<8x8x4xf32>
    %51 = tpu.matmul %50, %39, %cst_35 {dimension_numbers = #tpu.dot_dimension_numbers<[2], [1], [1], [2], [0, 0, 0, 1, 1, 2], [0], [0]>} : vector<8x8x8xf32>, vector<8x8x4xf32>, vector<8x8x4xf32> -> vector<8x8x4xf32>
    "tpu.trace_stop"() : () -> ()
    "tpu.trace_start"() <{level = 10 : i32, message = "hnd,hdc->hnc"}> : () -> ()
    %cst_36 = arith.constant dense<0.000000e+00> : vector<8x8x32xf32>
    %52 = tpu.matmul %51, %3, %cst_36 {dimension_numbers = #tpu.dot_dimension_numbers<[2], [1], [1], [2], [0, 0, 0, 1, 1, 2], [0], [0]>} : vector<8x8x4xf32>, vector<8x4x32xf32>, vector<8x8x32xf32> -> vector<8x8x32xf32>
    "tpu.trace_stop"() : () -> ()
    %cst_37 = arith.constant dense<0.000000e+00> : vector<8x32xf32>
    %53 = vector.multi_reduction <add>, %52, %cst_37 [0] : vector<8x8x32xf32> to vector<8x32xf32>
    %54 = vector.broadcast %4 : vector<1x32xf32> to vector<8x32xf32>
    %55 = arith.addf %53, %54 : vector<8x32xf32>
    %c1_38 = arith.constant 1 : index
    %c0_39 = arith.constant 0 : index
    %c0_40 = arith.constant 0 : index
    %56 = vector.load %arg7[%c1_38, %c0_39, %c0_40] : memref<2x8x32xf32, #tpu.memory_space<vmem>>, vector<1x8x32xf32>
    %57 = vector.shape_cast %56 : vector<1x8x32xf32> to vector<8x32xf32>
    %58 = vector.shape_cast %55 : vector<8x32xf32> to vector<1x8x32xf32>
    tpu.vector_store %arg7[%c1_38, %c0_39, %c0_40], %58 {strides = array<i32>} : memref<2x8x32xf32, #tpu.memory_space<vmem>>, vector<1x8x32xf32>,
    return
  }
  func.func @transform_0(%arg0: i32) -> (i32, i32, i32) {
    %c0_i32 = arith.constant 0 : i32
    %c0_i32_0 = arith.constant 0 : i32
    %c0_i32_1 = arith.constant 0 : i32
    return %arg0, %c0_i32, %c0_i32_0 : i32, i32, i32
  }
  func.func @transform_1(%arg0: i32) -> (i32, i32, i32) {
    %c0_i32 = arith.constant 0 : i32
    %c0_i32_0 = arith.constant 0 : i32
    %c0_i32_1 = arith.constant 0 : i32
    %c0_i32_2 = arith.constant 0 : i32
    return %c0_i32, %c0_i32_0, %c0_i32_1 : i32, i32, i32
  }
  func.func @transform_2(%arg0: i32) -> (i32, i32, i32) {
    %c0_i32 = arith.constant 0 : i32
    %c0_i32_0 = arith.constant 0 : i32
    %c0_i32_1 = arith.constant 0 : i32
    %c0_i32_2 = arith.constant 0 : i32
    return %c0_i32, %c0_i32_0, %c0_i32_1 : i32, i32, i32
  }
  func.func @transform_3(%arg0: i32) -> (i32, i32, i32) {
    %c0_i32 = arith.constant 0 : i32
    %c0_i32_0 = arith.constant 0 : i32
    %c0_i32_1 = arith.constant 0 : i32
    %c0_i32_2 = arith.constant 0 : i32
    return %c0_i32, %c0_i32_0, %c0_i32_1 : i32, i32, i32
  }
  func.func @transform_4(%arg0: i32) -> (i32, i32, i32) {
    %c0_i32 = arith.constant 0 : i32
    %c0_i32_0 = arith.constant 0 : i32
    %c0_i32_1 = arith.constant 0 : i32
    %c0_i32_2 = arith.constant 0 : i32
    return %c0_i32, %c0_i32_0, %c0_i32_1 : i32, i32, i32
  }
  func.func @transform_5(%arg0: i32) -> (i32, i32) {
    %c0_i32 = arith.constant 0 : i32
    %c0_i32_0 = arith.constant 0 : i32
    %c0_i32_1 = arith.constant 0 : i32
    return %c0_i32, %c0_i32_0 : i32, i32
  }
  func.func @transform_6(%arg0: i32) -> (i32, i32, i32) {
    %c0_i32 = arith.constant 0 : i32
    %c0_i32_0 = arith.constant 0 : i32
    %c0_i32_1 = arith.constant 0 : i32
    return %arg0, %c0_i32, %c0_i32_0 : i32, i32, i32
  }
}

</mosaic_0001>

<bundles_post_ra>
// kernel: tpu_custom_call.1
= control target key start
LH: loop header
LB: loop body
LE: loop exit
PB: predicated region body
PF: predicated region fallthrough
CT: control target
= control target key end

     0   :  { %v10138_v3 = vmov 0.0|0.0   ;;  %vm8928_vm0 = vmmov 0   ;;  %v10143_v11 = vmov 0.0   ;;  %vm130_vm1 = vcmask 261120   ;;  %s10131_s0 = inlined_call_operand.vmem [shape: f32[2,8,32], index: 0, kind: input, shape index: {}]   ;;  %s10132_s1 = inlined_call_operand.vmem [shape: f32[8,32,4], index: 1, kind: input, shape index: {}]   ;;  %s10133_s2 = inlined_call_operand.vmem [shape: f32[8,32,4], index: 2, kind: input, shape index: {}]   ;;  %s10134_s3 = inlined_call_operand.vmem [shape: f32[8,32,4], index: 3, kind: input, shape index: {}]   ;;  %s10135_s4 = inlined_call_operand.vmem [shape: f32[8,4,32], index: 4, kind: input, shape index: {}]   ;;  %s10136_s5 = inlined_call_operand.vmem [shape: f32[1,32], index: 5, kind: input, shape index: {}]   ;;  %s10137_s6 = inlined_call_operand.hbm [shape: f32[2,8,32], index: 6, kind: output, shape index: {}]  }
   0x1   :  { %v24_v0 = vld [vmem:[%s10132_s1] sm:$0xff]  ;;  %v25_v1 = vld [vmem:[%s10132_s1 + $0x8] sm:$0xff]  ;;  %8545 = vmatprep.subr.bf16.mxu0 %v10138_v3  ;;  %8551 = vmatprep.subr.bf16.mxu1 %v10138_v3  ;;  %v26_v6 = vld [vmem:[%s10132_s1 + $0x10] sm:$0xff] }
   0x2   :  { %v28_v2 = vld [vmem:[%s10132_s1 + $0x20] sm:$0xff]  ;;  %v8979_v4 = vpack.c.bf16 %v25_v1, %v24_v0  ;;  %v29_v5 = vld [vmem:[%s10132_s1 + $0x28] sm:$0xff]  ;;  %v27_v7 = vld [vmem:[%s10132_s1 + $0x18] sm:$0xff]  ;;  %7785 = vmatprep.mubr.msk.f32.mxu0 %vm8928_vm0, %v10143_v11  ;;  %7796 = vmatprep.mubr.msk.f32.mxu1 %vm8928_vm0, %v10143_v11 }
   0x3   :  { %v8990_v8 = vpack.c.bf16 %v29_v5, %v28_v2  ;;  %v30_v9 = vld [vmem:[%s10132_s1 + $0x30] sm:$0xff]  ;;  %v31_v10 = vld [vmem:[%s10132_s1 + $0x38] sm:$0xff]  ;;  %v9003_v12 = vpack.c.bf16 %v27_v7, %v26_v6  ;;  %v32_v14 = vld [vmem:[%s10132_s1 + $0x40] sm:$0xff] }
   0x4   :  { %8547 = vmatpush3.bf16.msra.mxu0 %v8979_v4  ;;  %v9007_v13 = vpack.c.bf16 %v31_v10, %v30_v9  ;;  %v33_v15 = vld [vmem:[%s10132_s1 + $0x48] sm:$0xff]  ;;  %v36_v16 = vld [vmem:[%s10132_s1 + $0x60] sm:$0xff]  ;;  %v34_v21 = vld [vmem:[%s10132_s1 + $0x50] sm:$0xff] }
   0x5   :  { %8553 = vmatpush3.bf16.msra.mxu1 %v8990_v8  ;;  %8548 = vmatprep.subr.bf16.mxu0 %v10138_v3  ;;  %v37_v17 = vld [vmem:[%s10132_s1 + $0x68] sm:$0xff]  ;;  %v9026_v18 = vld [vmem:[%s10131_s0] sm:$0xff]  ;;  %v9028_v19 = vpack.c.bf16 %v33_v15, %v32_v14  ;;  %v35_v22 = vld [vmem:[%s10132_s1 + $0x58] sm:$0xff] }
   0x6   :  { %8554 = vmatprep.subr.bf16.mxu1 %v10138_v3  ;;  %v9032_v20 = vpack.c.bf16 %v37_v17, %v36_v16  ;;  %v38_v23 = vld [vmem:[%s10132_s1 + $0x70] sm:$0xff]  ;;  %v39_v24 = vld [vmem:[%s10132_s1 + $0x78] sm:$0xff]  ;;  %v9052_v25 = vpack.c.bf16 %v35_v22, %v34_v21  ;;  %v40_v27 = vld [vmem:[%s10132_s1 + $0x80] sm:$0xff] }
   0x7   :  { %v9056_v26 = vpack.c.bf16 %v39_v24, %v38_v23  ;;  %v41_v28 = vld [vmem:[%s10132_s1 + $0x88] sm:$0xff]  ;;  %v44_v29 = vld [vmem:[%s10132_s1 + $0xa0] sm:$0xff]  ;;  %v42_v33 = vld [vmem:[%s10132_s1 + $0x90] sm:$0xff] }
   0x8   :  { %8550 = vmatpush3.bf16.msra.mxu0 %v9003_v12  ;;  %v45_v30 = vld [vmem:[%s10132_s1 + $0xa8] sm:$0xff]  ;;  %v9076_v31 = vpack.c.bf16 %v41_v28, %v40_v27  ;;  %v43_v34 = vld [vmem:[%s10132_s1 + $0x98] sm:$0xff]  ;;  %v46_v35 = vld [vmem:[%s10132_s1 + $0xb0] sm:$0xff] }
   0x9   :  { %8556 = vmatpush3.bf16.msra.mxu1 %v9007_v13  ;;  %8557 = vmatprep.subr.bf16.mxu0 %v10138_v3  ;;  %v9080_v32 = vpack.c.bf16 %v45_v30, %v44_v29  ;;  %v47_v36 = vld [vmem:[%s10132_s1 + $0xb8] sm:$0xff]  ;;  %v9100_v37 = vpack.c.bf16 %v43_v34, %v42_v33  ;;  %v48_v39 = vld [vmem:[%s10132_s1 + $0xc0] sm:$0xff]  ;;  %v49_v40 = vld [vmem:[%s10132_s1 + $0xc8] sm:$0xff] }
   0xa   :  { %8563 = vmatprep.subr.bf16.mxu1 %v10138_v3  ;;  %v9104_v38 = vpack.c.bf16 %v47_v36, %v46_v35  ;;  %v52_v41 = vld [vmem:[%s10132_s1 + $0xe0] sm:$0xff]  ;;  %v53_v42 = vld [vmem:[%s10132_s1 + $0xe8] sm:$0xff]  ;;  %v9124_v43 = vpack.c.bf16 %v49_v40, %v48_v39 }
   0xb   :  { %7786 = vmatmul.mubr.msk.f32.vlgmr.msra.gmra.mrb[0].mxu0 %vm130_vm1, %v9026_v18 }
   0xc   :  { %7797 = vmatmul.mubr.msk.f32.vlgmr.msra.gmra.mrb[0].mxu1 %vm130_vm1, %v9026_v18  ;;  %8559 = vmatpush3.bf16.msra.mxu0 %v9028_v19 }
   0xd   :  { %8565 = vmatpush3.bf16.msra.mxu1 %v9032_v20  ;;  %8560 = vmatprep.subr.bf16.mxu0 %v10138_v3 }
   0xe   :  { %8566 = vmatprep.subr.bf16.mxu1 %v10138_v3  ;;  %7807 = vmatprep.mubr.msk.f32.mxu0 %vm8928_vm0, %v10143_v11 }
   0xf   :  { %7818 = vmatprep.mubr.msk.f32.mxu1 %vm8928_vm0, %v10143_v11 }
  0x10   :  { %8562 = vmatpush3.bf16.msra.mxu0 %v9052_v25 }
  0x11   :  { %8568 = vmatpush3.bf16.msra.mxu1 %v9056_v26  ;;  %8569 = vmatprep.subr.bf16.mxu0 %v10138_v3 }
  0x12   :  { %8575 = vmatprep.subr.bf16.mxu1 %v10138_v3 }
  0x13   :  { %7808 = vmatmul.mubr.msk.f32.vlgmr.msra.gmra.mrb[2].mxu0 %vm130_vm1, %v9026_v18 }
  0x14   :  { %7819 = vmatmul.mubr.msk.f32.vlgmr.msra.gmra.mrb[2].mxu1 %vm130_vm1, %v9026_v18  ;;  %8571 = vmatpush3.bf16.msra.mxu0 %v9076_v31 }
  0x15   :  { %8577 = vmatpush3.bf16.msra.mxu1 %v9080_v32  ;;  %8572 = vmatprep.subr.bf16.mxu0 %v10138_v3 }
  0x16   :  { %8578 = vmatprep.subr.bf16.mxu1 %v10138_v3  ;;  %7829 = vmatprep.mubr.msk.f32.mxu0 %vm8928_vm0, %v10143_v11 }
  0x17   :  { %7840 = vmatprep.mubr.msk.f32.mxu1 %vm8928_vm0, %v10143_v11 }
  0x18   :  { %8574 = vmatpush3.bf16.msra.mxu0 %v9100_v37 }
  0x19   :  { %11 = vsyncpa [#allocation3], 0  ;;  %8580 = vmatpush3.bf16.msra.mxu1 %v9104_v38  ;;  %8581 = vmatprep.subr.bf16.mxu0 %v10138_v3  ;;  %v9128_v44 = vpack.c.bf16 %v53_v42, %v52_v41  ;;  %v50_v45 = vld [vmem:[%s10132_s1 + $0xd0] sm:$0xff]  ;;  %v51_v46 = vld [vmem:[%s10132_s1 + $0xd8] sm:$0xff]  ;;  %vm1814_vm2 = vcmask 31744   ;;  %vm2423_vm3 = vcmask 64512  }
  0x1a   :  { %8587 = vmatprep.subr.bf16.mxu1 %v10138_v3  ;;  %v54_v47 = vld [vmem:[%s10132_s1 + $0xf0] sm:$0xff]  ;;  %v55_v48 = vld [vmem:[%s10132_s1 + $0xf8] sm:$0xff]  ;;  %v9148_v49 = vpack.c.bf16 %v51_v46, %v50_v45  ;;  %v56_v51 = vld [vmem:[%s10133_s2] sm:$0xff]  ;;  %vm3099_vm4 = vcmask 1043456  }
  0x1b   :  { %7830 = vmatmul.mubr.msk.f32.vlgmr.msra.gmra.mrb[4].mxu0 %vm130_vm1, %v9026_v18  ;;  %v9152_v50 = vpack.c.bf16 %v55_v48, %v54_v47  ;;  %v57_v52 = vld [vmem:[%s10133_s2 + $0x8] sm:$0xff]  ;;  %v60_v53 = vld [vmem:[%s10133_s2 + $0x20] sm:$0xff]  ;;  %v58_v57 = vld [vmem:[%s10133_s2 + $0x10] sm:$0xff] }
  0x1c   :  { %7841 = vmatmul.mubr.msk.f32.vlgmr.msra.gmra.mrb[4].mxu1 %vm130_vm1, %v9026_v18  ;;  %8583 = vmatpush3.bf16.msra.mxu0 %v9124_v43  ;;  %v61_v54 = vld [vmem:[%s10133_s2 + $0x28] sm:$0xff]  ;;  %v9172_v55 = vpack.c.bf16 %v57_v52, %v56_v51  ;;  %v59_v58 = vld [vmem:[%s10133_s2 + $0x18] sm:$0xff]  ;;  %v62_v59 = vld [vmem:[%s10133_s2 + $0x30] sm:$0xff] }
  0x1d   :  { %8589 = vmatpush3.bf16.msra.mxu1 %v9128_v44  ;;  %8584 = vmatprep.subr.bf16.mxu0 %v10138_v3  ;;  %v9176_v56 = vpack.c.bf16 %v61_v54, %v60_v53  ;;  %v63_v60 = vld [vmem:[%s10133_s2 + $0x38] sm:$0xff]  ;;  %v9196_v61 = vpack.c.bf16 %v59_v58, %v58_v57  ;;  %v64_v63 = vld [vmem:[%s10133_s2 + $0x40] sm:$0xff]  ;;  %v65_v0 = vld [vmem:[%s10133_s2 + $0x48] sm:$0xff] }
  0x1e   :  { %8590 = vmatprep.subr.bf16.mxu1 %v10138_v3  ;;  %7851 = vmatprep.mubr.msk.f32.mxu0 %vm8928_vm0, %v10143_v11  ;;  %v9200_v62 = vpack.c.bf16 %v63_v60, %v62_v59  ;;  %v68_v1 = vld [vmem:[%s10133_s2 + $0x60] sm:$0xff]  ;;  %v69_v2 = vld [vmem:[%s10133_s2 + $0x68] sm:$0xff]  ;;  %v9220_v5 = vpack.c.bf16 %v65_v0, %v64_v63  ;;  %v66_v7 = vld [vmem:[%s10133_s2 + $0x50] sm:$0xff] }
  0x1f   :  { %7862 = vmatprep.mubr.msk.f32.mxu1 %vm8928_vm0, %v10143_v11  ;;  %v9224_v6 = vpack.c.bf16 %v69_v2, %v68_v1  ;;  %v67_v9 = vld [vmem:[%s10133_s2 + $0x58] sm:$0xff]  ;;  %v70_v10 = vld [vmem:[%s10133_s2 + $0x70] sm:$0xff]  ;;  %v72_v17 = vld [vmem:[%s10133_s2 + $0x80] sm:$0xff] }
  0x20   :  { %8586 = vmatpush3.bf16.msra.mxu0 %v9148_v49  ;;  %v71_v14 = vld [vmem:[%s10133_s2 + $0x78] sm:$0xff]  ;;  %v9244_v15 = vpack.c.bf16 %v67_v9, %v66_v7  ;;  %v73_v21 = vld [vmem:[%s10133_s2 + $0x88] sm:$0xff]  ;;  %v76_v22 = vld [vmem:[%s10133_s2 + $0xa0] sm:$0xff] }
  0x21   :  { %8592 = vmatpush3.bf16.msra.mxu1 %v9152_v50  ;;  %8593 = vmatprep.subr.bf16.mxu0 %v10138_v3  ;;  %v9248_v16 = vpack.c.bf16 %v71_v14, %v70_v10  ;;  %v77_v23 = vld [vmem:[%s10133_s2 + $0xa8] sm:$0xff]  ;;  %v9268_v24 = vpack.c.bf16 %v73_v21, %v72_v17  ;;  %v74_v28 = vld [vmem:[%s10133_s2 + $0x90] sm:$0xff]  ;;  %v75_v29 = vld [vmem:[%s10133_s2 + $0x98] sm:$0xff] }
  0x22   :  { %8599 = vmatprep.subr.bf16.mxu1 %v10138_v3  ;;  %v9272_v27 = vpack.c.bf16 %v77_v23, %v76_v22  ;;  %v78_v30 = vld [vmem:[%s10133_s2 + $0xb0] sm:$0xff]  ;;  %v79_v33 = vld [vmem:[%s10133_s2 + $0xb8] sm:$0xff]  ;;  %v9292_v34 = vpack.c.bf16 %v75_v29, %v74_v28  ;;  %v80_v36 = vld [vmem:[%s10133_s2 + $0xc0] sm:$0xff] }
  0x23   :  { %7852 = vmatmul.mubr.msk.f32.vlgmr.msra.gmra.mrb[6].mxu0 %vm130_vm1, %v9026_v18  ;;  %v9296_v35 = vpack.c.bf16 %v79_v33, %v78_v30  ;;  %v81_v39 = vld [vmem:[%s10133_s2 + $0xc8] sm:$0xff]  ;;  %v84_v40 = vld [vmem:[%s10133_s2 + $0xe0] sm:$0xff]  ;;  %v82_v46 = vld [vmem:[%s10133_s2 + $0xd0] sm:$0xff] }
  0x24   :  { %7863 = vmatmul.mubr.msk.f32.vlgmr.msra.gmra.mrb[6].mxu1 %vm130_vm1, %v9026_v18  ;;  %8595 = vmatpush3.bf16.msra.mxu0 %v9172_v55  ;;  %v85_v41 = vld [vmem:[%s10133_s2 + $0xe8] sm:$0xff]  ;;  %v9316_v42 = vpack.c.bf16 %v81_v39, %v80_v36  ;;  %v83_v47 = vld [vmem:[%s10133_s2 + $0xd8] sm:$0xff]  ;;  %v86_v48 = vld [vmem:[%s10133_s2 + $0xf0] sm:$0xff] }
  0x25   :  { %8601 = vmatpush3.bf16.msra.mxu1 %v9176_v56  ;;  %8596 = vmatprep.subr.bf16.mxu0 %v10138_v3  ;;  %v9320_v45 = vpack.c.bf16 %v85_v41, %v84_v40  ;;  %v87_v51 = vld [vmem:[%s10133_s2 + $0xf8] sm:$0xff]  ;;  %v9340_v52 = vpack.c.bf16 %v83_v47, %v82_v46  ;;  %v88_v54 = vld [vmem:[%s10134_s3] sm:$0xff]  ;;  %v89_v57 = vld [vmem:[%s10134_s3 + $0x8] sm:$0xff] }
  0x26   :  { %8602 = vmatprep.subr.bf16.mxu1 %v10138_v3  ;;  %7873 = vmatprep.mubr.msk.f32.mxu0 %vm8928_vm0, %v10143_v11  ;;  %v9344_v53 = vpack.c.bf16 %v87_v51, %v86_v48  ;;  %v92_v58 = vld [vmem:[%s10134_s3 + $0x20] sm:$0xff]  ;;  %v93_v59 = vld [vmem:[%s10134_s3 + $0x28] sm:$0xff]  ;;  %v9364_v60 = vpack.c.bf16 %v89_v57, %v88_v54  ;;  %v90_v0 = vld [vmem:[%s10134_s3 + $0x10] sm:$0xff] }
  0x27   :  { %7884 = vmatprep.mubr.msk.f32.mxu1 %vm8928_vm0, %v10143_v11  ;;  %v9368_v63 = vpack.c.bf16 %v93_v59, %v92_v58  ;;  %v91_v1 = vld [vmem:[%s10134_s3 + $0x18] sm:$0xff]  ;;  %v94_v2 = vld [vmem:[%s10134_s3 + $0x30] sm:$0xff]  ;;  %v96_v14 = vld [vmem:[%s10134_s3 + $0x40] sm:$0xff] }
  0x28   :  { %8598 = vmatpush3.bf16.msra.mxu0 %v9196_v61  ;;  %v9392_v7 = vpack.c.bf16 %v91_v1, %v90_v0  ;;  %v95_v9 = vld [vmem:[%s10134_s3 + $0x38] sm:$0xff]  ;;  %v97_v17 = vld [vmem:[%s10134_s3 + $0x48] sm:$0xff]  ;;  %v100_v21 = vld [vmem:[%s10134_s3 + $0x60] sm:$0xff] }
  0x29   :  { %8604 = vmatpush3.bf16.msra.mxu1 %v9200_v62  ;;  %8605 = vmatprep.subr.bf16.mxu0 %v10138_v3  ;;  %10157 = vst [vmem:[#allocation5_spill] sm:$0xff] %v9368_v63  ;;  %v9397_v10 = vpack.c.bf16 %v95_v9, %v94_v2  ;;  %v9412_v22 = vpack.c.bf16 %v97_v17, %v96_v14  ;;  %v101_v23 = vld [vmem:[%s10134_s3 + $0x68] sm:$0xff]  ;;  %v98_v29 = vld [vmem:[%s10134_s3 + $0x50] sm:$0xff]  ;;  %v99_v30 = vld [vmem:[%s10134_s3 + $0x58] sm:$0xff] }
  0x2a   :  { %8611 = vmatprep.subr.bf16.mxu1 %v10138_v3  ;;  %10158 = vst [vmem:[#allocation6_spill] sm:$0xff] %v9392_v7  ;;  %v9419_v28 = vpack.c.bf16 %v101_v23, %v100_v21  ;;  %v102_v33 = vld [vmem:[%s10134_s3 + $0x70] sm:$0xff]  ;;  %v9436_v36 = vpack.c.bf16 %v99_v30, %v98_v29  ;;  %v103_v39 = vld [vmem:[%s10134_s3 + $0x78] sm:$0xff]  ;;  %v104_v41 = vld [vmem:[%s10134_s3 + $0x80] sm:$0xff] }
  0x2b   :  { %7874 = vmatmul.mubr.msk.f32.vlgmr.msra.gmra.mrb[8].mxu0 %vm130_vm1, %v9026_v18  ;;  %10159 = vst [vmem:[#allocation7_spill] sm:$0xff] %v9397_v10  ;;  %10160 = vst [vmem:[#allocation8_spill] sm:$0xff] %v9412_v22  ;;  %v9443_v40 = vpack.c.bf16 %v103_v39, %v102_v33  ;;  %v105_v46 = vld [vmem:[%s10134_s3 + $0x88] sm:$0xff]  ;;  %v108_v47 = vld [vmem:[%s10134_s3 + $0xa0] sm:$0xff] }
  0x2c   :  { %7885 = vmatmul.mubr.msk.f32.vlgmr.msra.gmra.mrb[8].mxu1 %vm130_vm1, %v9026_v18  ;;  %8607 = vmatpush3.bf16.msra.mxu0 %v9220_v5  ;;  %10161 = vst [vmem:[#allocation9_spill] sm:$0xff] %v9419_v28  ;;  %10162 = vst [vmem:[#allocation10_spill] sm:$0xff] %v9436_v36  ;;  %v9460_v48 = vpack.c.bf16 %v105_v46, %v104_v41  ;;  %v109_v51 = vld [vmem:[%s10134_s3 + $0xa8] sm:$0xff]  ;;  %v106_v57 = vld [vmem:[%s10134_s3 + $0x90] sm:$0xff] }
  0x2d   :  { %8613 = vmatpush3.bf16.msra.mxu1 %v9224_v6  ;;  %8608 = vmatprep.subr.bf16.mxu0 %v10138_v3  ;;  %10163 = vst [vmem:[#allocation11_spill] sm:$0xff] %v9443_v40  ;;  %v9467_v54 = vpack.c.bf16 %v109_v51, %v108_v47  ;;  %v107_v58 = vld [vmem:[%s10134_s3 + $0x98] sm:$0xff]  ;;  %v110_v59 = vld [vmem:[%s10134_s3 + $0xb0] sm:$0xff]  ;;  %v112_v9 = vld [vmem:[%s10134_s3 + $0xc0] sm:$0xff] }
  0x2e   :  { %8614 = vmatprep.subr.bf16.mxu1 %v10138_v3  ;;  %7895 = vmatprep.mubr.msk.f32.mxu0 %vm8928_vm0, %v10143_v11  ;;  %10164 = vst [vmem:[#allocation12_spill] sm:$0xff] %v9460_v48  ;;  %v9484_v0 = vpack.c.bf16 %v107_v58, %v106_v57  ;;  %v111_v1 = vld [vmem:[%s10134_s3 + $0xb8] sm:$0xff]  ;;  %v113_v14 = vld [vmem:[%s10134_s3 + $0xc8] sm:$0xff]  ;;  %v116_v17 = vld [vmem:[%s10134_s3 + $0xe0] sm:$0xff] }
  0x2f   :  { %7906 = vmatprep.mubr.msk.f32.mxu1 %vm8928_vm0, %v10143_v11  ;;  %10165 = vst [vmem:[#allocation13_spill] sm:$0xff] %v9467_v54  ;;  %v9491_v2 = vpack.c.bf16 %v111_v1, %v110_v59  ;;  %v9508_v21 = vpack.c.bf16 %v113_v14, %v112_v9  ;;  %v117_v23 = vld [vmem:[%s10134_s3 + $0xe8] sm:$0xff]  ;;  %v114_v30 = vld [vmem:[%s10134_s3 + $0xd0] sm:$0xff]  ;;  %v115_v33 = vld [vmem:[%s10134_s3 + $0xd8] sm:$0xff] }
  0x30   :  { %8610 = vmatpush3.bf16.msra.mxu0 %v9244_v15  ;;  %10166 = vst [vmem:[#allocation14_spill] sm:$0xff] %v9484_v0  ;;  %v9515_v29 = vpack.c.bf16 %v117_v23, %v116_v17  ;;  %v118_v39 = vld [vmem:[%s10134_s3 + $0xf0] sm:$0xff]  ;;  %v9532_v41 = vpack.c.bf16 %v115_v33, %v114_v30  ;;  %v119_v46 = vld [vmem:[%s10134_s3 + $0xf8] sm:$0xff] }
  0x31   :  { %8616 = vmatpush3.bf16.msra.mxu1 %v9248_v16  ;;  %8617 = vmatprep.subr.bf16.mxu0 %v10138_v3  ;;  %10167 = vst [vmem:[#allocation15_spill] sm:$0xff] %v9491_v2  ;;  %10168 = vst [vmem:[#allocation16_spill] sm:$0xff] %v9508_v21  ;;  %v9539_v47 = vpack.c.bf16 %v119_v46, %v118_v39 }
  0x32   :  { %8623 = vmatprep.subr.bf16.mxu1 %v10138_v3  ;;  %10169 = vst [vmem:[#allocation17_spill] sm:$0xff] %v9515_v29  ;;  %10170 = vst [vmem:[#allocation18_spill] sm:$0xff] %v9532_v41 }
  0x33   :  { %7896 = vmatmul.mubr.msk.f32.vlgmr.msra.gmra.mrb[10].mxu0 %vm130_vm1, %v9026_v18  ;;  %10171 = vst [vmem:[#allocation19_spill] sm:$0xff] %v9539_v47 }
  0x34   :  { %7907 = vmatmul.mubr.msk.f32.vlgmr.msra.gmra.mrb[10].mxu1 %vm130_vm1, %v9026_v18  ;;  %8619 = vmatpush3.bf16.msra.mxu0 %v9268_v24 }
  0x35   :  { %8625 = vmatpush3.bf16.msra.mxu1 %v9272_v27  ;;  %8620 = vmatprep.subr.bf16.mxu0 %v10138_v3 }
  0x36   :  { %8626 = vmatprep.subr.bf16.mxu1 %v10138_v3  ;;  %7917 = vmatprep.mubr.msk.f32.mxu0 %vm8928_vm0, %v10143_v11 }
  0x37   :  { %7928 = vmatprep.mubr.msk.f32.mxu1 %vm8928_vm0, %v10143_v11 }
  0x38   :  { %8622 = vmatpush3.bf16.msra.mxu0 %v9292_v34 }
  0x39   :  { %8628 = vmatpush3.bf16.msra.mxu1 %v9296_v35  ;;  %8629 = vmatprep.subr.bf16.mxu0 %v10138_v3 }
  0x3a   :  { %8635 = vmatprep.subr.bf16.mxu1 %v10138_v3 }
  0x3b   :  { %7918 = vmatmul.mubr.msk.f32.vlgmr.msra.gmra.mrb[12].mxu0 %vm130_vm1, %v9026_v18 }
  0x3c   :  { %7929 = vmatmul.mubr.msk.f32.vlgmr.msra.gmra.mrb[12].mxu1 %vm130_vm1, %v9026_v18  ;;  %8631 = vmatpush3.bf16.msra.mxu0 %v9316_v42 }
  0x3d   :  { %8637 = vmatpush3.bf16.msra.mxu1 %v9320_v45  ;;  %8632 = vmatprep.subr.bf16.mxu0 %v10138_v3 }
  0x3e   :  { %8638 = vmatprep.subr.bf16.mxu1 %v10138_v3  ;;  %7939 = vmatprep.mubr.msk.f32.mxu0 %vm8928_vm0, %v10143_v11 }
  0x3f   :  { %7950 = vmatprep.mubr.msk.f32.mxu1 %vm8928_vm0, %v10143_v11 }
  0x40   :  { %8634 = vmatpush3.bf16.msra.mxu0 %v9340_v52 }
  0x41   :  { %8640 = vmatpush3.bf16.msra.mxu1 %v9344_v53  ;;  %8641 = vmatprep.subr.bf16.mxu0 %v10138_v3 }
  0x42   :  { %8647 = vmatprep.subr.bf16.mxu1 %v10138_v3 }
  0x43   :  { %7940 = vmatmul.mubr.msk.f32.vlgmr.msra.gmra.mrb[14].mxu0 %vm130_vm1, %v9026_v18 }
  0x44   :  { %7951 = vmatmul.mubr.msk.f32.vlgmr.msra.gmra.mrb[14].mxu1 %vm130_vm1, %v9026_v18  ;;  %8643 = vmatpush3.bf16.msra.mxu0 %v9364_v60 }
  0x45   :  { %8649 = vmatpush3.bf16.msra.mxu1 %v9368_v63  ;;  %8644 = vmatprep.subr.bf16.mxu0 %v10138_v3 }
  0x46   :  { %8650 = vmatprep.subr.bf16.mxu1 %v10138_v3  ;;  %7961 = vmatprep.mubr.msk.f32.mxu0 %vm8928_vm0, %v10143_v11 }
  0x47   :  { %7972 = vmatprep.mubr.msk.f32.mxu1 %vm8928_vm0, %v10143_v11 }
  0x48   :  { %8646 = vmatpush3.bf16.msra.mxu0 %v9392_v7 }
  0x49   :  { %8652 = vmatpush3.bf16.msra.mxu1 %v9397_v10  ;;  %8653 = vmatprep.subr.bf16.mxu0 %v10138_v3 }
  0x4a   :  { %8659 = vmatprep.subr.bf16.mxu1 %v10138_v3 }
  0x4b   :  { %7962 = vmatmul.mubr.msk.f32.vlgmr.msra.gmra.mrb[16].mxu0 %vm130_vm1, %v9026_v18 }
  0x4c   :  { %7973 = vmatmul.mubr.msk.f32.vlgmr.msra.gmra.mrb[16].mxu1 %vm130_vm1, %v9026_v18  ;;  %8655 = vmatpush3.bf16.msra.mxu0 %v9412_v22 }
  0x4d   :  { %8661 = vmatpush3.bf16.msra.mxu1 %v9419_v28  ;;  %8656 = vmatprep.subr.bf16.mxu0 %v10138_v3 }
  0x4e   :  { %8662 = vmatprep.subr.bf16.mxu1 %v10138_v3  ;;  %7983 = vmatprep.mubr.msk.f32.mxu0 %vm8928_vm0, %v10143_v11 }
  0x4f   :  { %7994 = vmatprep.mubr.msk.f32.mxu1 %vm8928_vm0, %v10143_v11 }
  0x50   :  { %8658 = vmatpush3.bf16.msra.mxu0 %v9436_v36 }
  0x51   :  { %8664 = vmatpush3.bf16.msra.mxu1 %v9443_v40  ;;  %8665 = vmatprep.subr.bf16.mxu0 %v10138_v3 }
  0x52   :  { %8671 = vmatprep.subr.bf16.mxu1 %v10138_v3 }
  0x53   :  { %7984 = vmatmul.mubr.msk.f32.vlgmr.msra.gmra.mrb[18].mxu0 %vm130_vm1, %v9026_v18 }
  0x54   :  { %7995 = vmatmul.mubr.msk.f32.vlgmr.msra.gmra.mrb[18].mxu1 %vm130_vm1, %v9026_v18  ;;  %8667 = vmatpush3.bf16.msra.mxu0 %v9460_v48 }
  0x55   :  { %8673 = vmatpush3.bf16.msra.mxu1 %v9467_v54  ;;  %8668 = vmatprep.subr.bf16.mxu0 %v10138_v3 }
  0x56   :  { %8674 = vmatprep.subr.bf16.mxu1 %v10138_v3  ;;  %8005 = vmatprep.mubr.msk.f32.mxu0 %vm8928_vm0, %v10143_v11 }
  0x57   :  { %8016 = vmatprep.mubr.msk.f32.mxu1 %vm8928_vm0, %v10143_v11 }
  0x58   :  { %8670 = vmatpush3.bf16.msra.mxu0 %v9484_v0 }
  0x59   :  { %8676 = vmatpush3.bf16.msra.mxu1 %v9491_v2  ;;  %8677 = vmatprep.subr.bf16.mxu0 %v10138_v3 }
  0x5a   :  { %8683 = vmatprep.subr.bf16.mxu1 %v10138_v3 }
  0x5b   :  { %8006 = vmatmul.mubr.msk.f32.vlgmr.msra.gmra.mrb[20].mxu0 %vm130_vm1, %v9026_v18 }
  0x5c   :  { %8017 = vmatmul.mubr.msk.f32.vlgmr.msra.gmra.mrb[20].mxu1 %vm130_vm1, %v9026_v18  ;;  %8679 = vmatpush3.bf16.msra.mxu0 %v9508_v21 }
  0x5d   :  { %8685 = vmatpush3.bf16.msra.mxu1 %v9515_v29  ;;  %8680 = vmatprep.subr.bf16.mxu0 %v10138_v3 }
  0x5e   :  { %8686 = vmatprep.subr.bf16.mxu1 %v10138_v3  ;;  %8027 = vmatprep.mubr.msk.f32.mxu0 %vm8928_vm0, %v10143_v11 }
  0x5f   :  { %8038 = vmatprep.mubr.msk.f32.mxu1 %vm8928_vm0, %v10143_v11 }
  0x60   :  { %8682 = vmatpush3.bf16.msra.mxu0 %v9532_v41 }
  0x61   :  { %8688 = vmatpush3.bf16.msra.mxu1 %v9539_v47  ;;  %8041 = vmatprep.subr.mxu0 %v10143_v11 }
  0x62   :  { %8046 = vmatprep.subr.mxu1 %v10143_v11 }
  0x63   :  { %8028 = vmatmul.mubr.msk.f32.vlgmr.msra.gmra.mrb[22].mxu0 %vm130_vm1, %v9026_v18 }
  0x64   :  { %8039 = vmatmul.mubr.msk.f32.vlgmr.msra.gmra.mrb[22].mxu1 %vm130_vm1, %v9026_v18  ;;  %8043 = vmatprep.mubr.msk.f32.mxu0 %vm8928_vm0, %v10143_v11 }
  0x65   :  { %8048 = vmatprep.mubr.msk.f32.mxu1 %vm8928_vm0, %v10143_v11 }
  0xde   :  { %v200_v51 = vpop.f32.mrb[0].mxu0 }
  0xdf   :  { %v7787_v57 = vpop.f32.mrb[1].mxu0  ;;  %v270_v58 = vpop.f32.mrb[0].mxu1 }
  0xe0   :  { %v7798_v59 = vpop.f32.mrb[1].mxu1 }
  0xe1   :  { %v10172_v59 = vmov 0.0  }
  0xe6   :  { %v340_v1 = vpop.f32.mrb[2].mxu0 }
  0xe7   :  { %v7809_v9 = vpop.f32.mrb[3].mxu0  ;;  %v410_v14 = vpop.f32.mrb[2].mxu1 }
  0xe8   :  { %v7820_v17 = vpop.f32.mrb[3].mxu1 }
  0xee   :  { %v480_v23 = vpop.f32.mrb[4].mxu0 }
  0xef   :  { %v7831_v30 = vpop.f32.mrb[5].mxu0  ;;  %v550_v33 = vpop.f32.mrb[4].mxu1 }
  0xf0   :  { %v7842_v39 = vpop.f32.mrb[5].mxu1 }
  0xf6   :  { %v620_v46 = vpop.f32.mrb[6].mxu0 }
  0xf7   :  { %v7853_v18 = vpop.f32.mrb[7].mxu0  ;;  %v690_v3 = vpop.f32.mrb[6].mxu1 }
  0xf8   :  { %v7864_v47 = vpop.f32.mrb[7].mxu1 }
  0xfe   :  { %v760_v41 = vpop.f32.mrb[8].mxu0 }
  0xff   :  { %v830_v29 = vpop.f32.mrb[8].mxu1  ;;  %v7875_v11 = vpop.f32.mrb[9].mxu0  ;;  %8042 = vmatpush3.xpose.msk.msra.mxu0 %vm1814_vm2, %v760_v41 }
 0x100   :  { %8047 = vmatpush3.xpose.msk.msra.mxu1 %vm1814_vm2, %v830_v29  ;;  %v7886_v57 = vpop.f32.mrb[9].mxu1  ;;  %8051 = vmatprep.subr.mxu0 %v10172_v59 }
 0x101   :  { %8056 = vmatprep.subr.mxu1 %v10172_v59 }
 0x102   :  { %8044 = vmatmul.mubr.msk.f32.vlgmr.msra.gmra.mrb[24].mxu0 %vm1814_vm2, %v200_v51 }
 0x103   :  { %8049 = vmatmul.mubr.msk.f32.vlgmr.msra.gmra.mrb[24].mxu1 %vm1814_vm2, %v270_v58  ;;  %8053 = vmatprep.mubr.msk.f32.mxu0 %vm8928_vm0, %v10172_v59 }
 0x104   :  { %8058 = vmatprep.mubr.msk.f32.mxu1 %vm8928_vm0, %v10172_v59 }
 0x106   :  { %v900_v11 = vpop.f32.mrb[10].mxu0 }
 0x107   :  { %v970_v47 = vpop.f32.mrb[10].mxu1  ;;  %v7897_v41 = vpop.f32.mrb[11].mxu0  ;;  %8052 = vmatpush3.xpose.msk.msra.mxu0 %vm1814_vm2, %v900_v11 }
 0x108   :  { %8057 = vmatpush3.xpose.msk.msra.mxu1 %vm1814_vm2, %v970_v47  ;;  %v7908_v29 = vpop.f32.mrb[11].mxu1  ;;  %8061 = vmatprep.subr.mxu0 %v10172_v59 }
 0x109   :  { %8066 = vmatprep.subr.mxu1 %v10172_v59 }
 0x10a   :  { %8054 = vmatmul.mubr.msk.f32.vlgmr.msra.gmra.mrb[26].mxu0 %vm1814_vm2, %v340_v1 }
 0x10b   :  { %8059 = vmatmul.mubr.msk.f32.vlgmr.msra.gmra.mrb[26].mxu1 %vm1814_vm2, %v410_v14  ;;  %8063 = vmatprep.mubr.msk.f32.mxu0 %vm8928_vm0, %v10172_v59 }
 0x10c   :  { %8068 = vmatprep.mubr.msk.f32.mxu1 %vm8928_vm0, %v10172_v59 }
 0x10e   :  { %v1040_v51 = vpop.f32.mrb[12].mxu0 }
 0x10f   :  { %v1110_v58 = vpop.f32.mrb[12].mxu1  ;;  %v7919_v9 = vpop.f32.mrb[13].mxu0  ;;  %8062 = vmatpush3.xpose.msk.msra.mxu0 %vm1814_vm2, %v1040_v51 }
 0x110   :  { %8067 = vmatpush3.xpose.msk.msra.mxu1 %vm1814_vm2, %v1110_v58  ;;  %v7930_v17 = vpop.f32.mrb[13].mxu1  ;;  %8071 = vmatprep.subr.mxu0 %v10172_v59 }
 0x111   :  { %8076 = vmatprep.subr.mxu1 %v10172_v59 }
 0x112   :  { %8064 = vmatmul.mubr.msk.f32.vlgmr.msra.gmra.mrb[28].mxu0 %vm1814_vm2, %v480_v23 }
 0x113   :  { %8069 = vmatmul.mubr.msk.f32.vlgmr.msra.gmra.mrb[28].mxu1 %vm1814_vm2, %v550_v33  ;;  %8073 = vmatprep.mubr.msk.f32.mxu0 %vm8928_vm0, %v10172_v59 }
 0x114   :  { %8078 = vmatprep.mubr.msk.f32.mxu1 %vm8928_vm0, %v10172_v59 }
 0x116   :  { %v1180_v1 = vpop.f32.mrb[14].mxu0 }
 0x117   :  { %v1250_v14 = vpop.f32.mrb[14].mxu1  ;;  %v7941_v30 = vpop.f32.mrb[15].mxu0  ;;  %8072 = vmatpush3.xpose.msk.msra.mxu0 %vm1814_vm2, %v1180_v1 }
 0x118   :  { %8077 = vmatpush3.xpose.msk.msra.mxu1 %vm1814_vm2, %v1250_v14  ;;  %v7952_v39 = vpop.f32.mrb[15].mxu1  ;;  %8081 = vmatprep.subr.mxu0 %v10172_v59 }
 0x119   :  { %8086 = vmatprep.subr.mxu1 %v10172_v59 }
 0x11a   :  { %8074 = vmatmul.mubr.msk.f32.vlgmr.msra.gmra.mrb[30].mxu0 %vm1814_vm2, %v620_v46 }
 0x11b   :  { %8079 = vmatmul.mubr.msk.f32.vlgmr.msra.gmra.mrb[30].mxu1 %vm1814_vm2, %v690_v3  ;;  %8083 = vmatprep.mubr.msk.f32.mxu0 %vm8928_vm0, %v10172_v59 }
 0x11c   :  { %8088 = vmatprep.mubr.msk.f32.mxu1 %vm8928_vm0, %v10172_v59 }
 0x11e   :  { %v1320_v23 = vpop.f32.mrb[16].mxu0 }
 0x11f   :  { %v7963_v33 = vpop.f32.mrb[17].mxu0  ;;  %8082 = vmatpush3.msra.mxu0 %v1320_v23  ;;  %v1390_v18 = vpop.f32.mrb[16].mxu1 }
 0x120   :  { %v7974_v57 = vpop.f32.mrb[17].mxu1  ;;  %8087 = vmatpush3.msra.mxu1 %v1390_v18  ;;  %8091 = vmatprep.subr.mxu0 %v10172_v59 }
 0x121   :  { %8096 = vmatprep.subr.mxu1 %v10172_v59 }
 0x126   :  { %v9597_v11 = vpop.f32.mrb[18].mxu0 }
 0x127   :  { %v7985_v46 = vpop.f32.mrb[19].mxu0  ;;  %v9599_v3 = vpop.f32.mrb[18].mxu1 }
 0x128   :  { %v7996_v47 = vpop.f32.mrb[19].mxu1 }
 0x12e   :  { %v9601_v41 = vpop.f32.mrb[20].mxu0 }
 0x12f   :  { %v8007_v29 = vpop.f32.mrb[21].mxu0  ;;  %v9603_v51 = vpop.f32.mrb[20].mxu1 }
 0x130   :  { %v8018_v58 = vpop.f32.mrb[21].mxu1 }
 0x136   :  { %v9605_v9 = vpop.f32.mrb[22].mxu0 }
 0x137   :  { %v9607_v17 = vpop.f32.mrb[22].mxu1  ;;  %v8029_v1 = vpop.f32.mrb[23].mxu0 }
 0x138   :  { %v8040_v14 = vpop.f32.mrb[23].mxu1 }
 0x1d5   :  { %v1887_v30 = vpop.f32.mrb[24].mxu0 }
 0x1d6   :  { %v1963_v39 = vpop.f32.mrb[24].mxu1  ;;  %v8045_v23 = vpop.f32.mrb[25].mxu0  ;;  %v2424_v33 = vsel %vm2423_vm3, %v1887_v30, -inf }
 0x1d7   :  { %v8050_v18 = vpop.f32.mrb[25].mxu1  ;;  %2425 = vmax.xlane.f32.xlu0 %v2424_v33  ;;  %v2427_v57 = vsel %vm2423_vm3, %v1963_v39, -inf }
 0x1db   :  { %2428 = vmax.xlane.f32.xlu0 %v2427_v57 }
 0x1dd   :  { %v2039_v46 = vpop.f32.mrb[26].mxu0 }
 0x1de   :  { %v2115_v47 = vpop.f32.mrb[26].mxu1  ;;  %v8055_v29 = vpop.f32.mrb[27].mxu0  ;;  %v2430_v58 = vsel %vm2423_vm3, %v2039_v46, -inf }
 0x1df   :  { %v8060_v21 = vpop.f32.mrb[27].mxu1  ;;  %2431 = vmax.xlane.f32.xlu1 %v2430_v58  ;;  %v2433_v1 = vsel %vm2423_vm3, %v2115_v47, -inf }
 0x1e3   :  { %2434 = vmax.xlane.f32.xlu1 %v2433_v1 }
 0x1e5   :  { %v2191_v14 = vpop.f32.mrb[28].mxu0 }
 0x1e6   :  { %v2267_v2 = vpop.f32.mrb[28].mxu1  ;;  %v8065_v23 = vpop.f32.mrb[29].mxu0  ;;  %v2436_v0 = vsel %vm2423_vm3, %v2191_v14, -inf }
 0x1e7   :  { %v8070_v18 = vpop.f32.mrb[29].mxu1  ;;  %v2439_v33 = vsel %vm2423_vm3, %v2267_v2, -inf  ;;  %2437 = vmax.xlane.f32.xlu0 %v2436_v0 }
 0x1e8   :  { %2440 = vmax.xlane.f32.xlu1 %v2439_v33 }
 0x1ed   :  { %v2343_v57 = vpop.f32.mrb[30].mxu0 }
 0x1ee   :  { %v2419_v54 = vpop.f32.mrb[30].mxu1  ;;  %v8075_v29 = vpop.f32.mrb[31].mxu0  ;;  %v2442_v48 = vsel %vm2423_vm3, %v2343_v57, -inf }
 0x1ef   :  { %v8080_v21 = vpop.f32.mrb[31].mxu1  ;;  %v2445_v58 = vsel %vm2423_vm3, %v2419_v54, -inf  ;;  %2443 = vmax.xlane.f32.xlu0 %v2442_v48 }
 0x1f0   :  { %2446 = vmax.xlane.f32.xlu1 %v2445_v58 }
 0x264   :  { %v2426_v1 = vpop.xlane.xlu0 %2425 }
 0x265   :  { %v2448_v40 = vsub.f32 %v1887_v30, %v2426_v1 }
 0x267   :  { %v2456_v23 = vmul.f32 1.442695, %v2448_v40 }
 0x268   :  { %v2429_v36 = vpop.xlane.xlu0 %2428 }
 0x269   :  { %8839 = vpow2.f32 %v2456_v23  ;;  %v2449_v18 = vsub.f32 %v1963_v39, %v2429_v36 }
 0x26b   :  { %v2458_v28 = vmul.f32 1.442695, %v2449_v18 }
 0x26c   :  { %v2432_v22 = vpop.xlane.xlu1 %2431 }
 0x26d   :  { %8841 = vpow2.f32 %v2458_v28  ;;  %v2450_v0 = vsub.f32 %v2039_v46, %v2432_v22 }
 0x26f   :  { %v2460_v33 = vmul.f32 1.442695, %v2450_v0 }
 0x270   :  { %v2435_v10 = vpop.xlane.xlu1 %2434 }
 0x271   :  { %8843 = vpow2.f32 %v2460_v33  ;;  %v2451_v29 = vsub.f32 %v2115_v47, %v2435_v10 }
 0x273   :  { %v8840_v7 = vpop.eup %8839  ;;  %v2462_v21 = vmul.f32 1.442695, %v2451_v29 }
 0x274   :  { %v2438_v63 = vpop.xlane.xlu0 %2437  ;;  %v2472_v48 = vsel %vm2423_vm3, %v8840_v7, 0.0 }
 0x275   :  { %8845 = vpow2.f32 %v2462_v21  ;;  %v2441_v58 = vpop.xlane.xlu1 %2440  ;;  %v2452_v30 = vsub.f32 %v2191_v14, %v2438_v63  ;;  %2473 = vadd.xlane.f32.xlu0 %v2472_v48 }
 0x276   :  { %v2453_v40 = vsub.f32 %v2267_v2, %v2441_v58 }
 0x277   :  { %v8842_v1 = vpop.eup %8841  ;;  %v2464_v36 = vmul.f32 1.442695, %v2452_v30 }
 0x278   :  { %v2466_v39 = vmul.f32 1.442695, %v2453_v40  ;;  %v2475_v28 = vsel %vm2423_vm3, %v8842_v1, 0.0 }
 0x279   :  { %8847 = vpow2.f32 %v2464_v36  ;;  %2476 = vadd.xlane.f32.xlu1 %v2475_v28 }
 0x27a   :  { %8849 = vpow2.f32 %v2466_v39 }
 0x27b   :  { %v8844_v22 = vpop.eup %8843 }
 0x27c   :  { %v2444_v10 = vpop.xlane.xlu0 %2443  ;;  %v2478_v46 = vsel %vm2423_vm3, %v8844_v22, 0.0 }
 0x27d   :  { %v2447_v47 = vpop.xlane.xlu1 %2446  ;;  %v2454_v23 = vsub.f32 %v2343_v57, %v2444_v10  ;;  %2479 = vadd.xlane.f32.xlu0 %v2478_v46 }
 0x27e   :  { %v2455_v18 = vsub.f32 %v2419_v54, %v2447_v47 }
 0x27f   :  { %v8846_v0 = vpop.eup %8845  ;;  %v2468_v63 = vmul.f32 1.442695, %v2454_v23 }
 0x280   :  { %v2470_v14 = vmul.f32 1.442695, %v2455_v18  ;;  %v2481_v2 = vsel %vm2423_vm3, %v8846_v0, 0.0 }
 0x281   :  { %8851 = vpow2.f32 %v2468_v63  ;;  %2482 = vadd.xlane.f32.xlu1 %v2481_v2 }
 0x282   :  { %8853 = vpow2.f32 %v2470_v14 }
 0x283   :  { %v8848_v33 = vpop.eup %8847 }
 0x284   :  { %v8850_v29 = vpop.eup %8849  ;;  %v2484_v21 = vsel %vm2423_vm3, %v8848_v33, 0.0 }
 0x285   :  { %v2487_v48 = vsel %vm2423_vm3, %v8850_v29, 0.0  ;;  %2485 = vadd.xlane.f32.xlu0 %v2484_v21 }
 0x286   :  { %2488 = vadd.xlane.f32.xlu1 %v2487_v48 }
 0x28b   :  { %v8852_v58 = vpop.eup %8851 }
 0x28c   :  { %v8854_v57 = vpop.eup %8853  ;;  %v2490_v54 = vsel %vm2423_vm3, %v8852_v58, 0.0 }
 0x28d   :  { %v2493_v30 = vsel %vm2423_vm3, %v8854_v57, 0.0  ;;  %2491 = vadd.xlane.f32.xlu0 %v2490_v54 }
 0x28e   :  { %2494 = vadd.xlane.f32.xlu1 %v2493_v30  ;;  %v9690_v30 = vld [vmem:[%s10135_s4 + $0xc] sm:$0xf] }
 0x302   :  { %v2474_v40 = vpop.xlane.xlu0 %2473 }
 0x303   :  { %8855 = vrcp.f32 %v2474_v40 }
 0x306   :  { %v2477_v36 = vpop.xlane.xlu1 %2476 }
 0x307   :  { %8857 = vrcp.f32 %v2477_v36 }
 0x30a   :  { %v2480_v39 = vpop.xlane.xlu0 %2479 }
 0x30b   :  { %8859 = vrcp.f32 %v2480_v39  ;;  %v9702_v39 = vld [vmem:[%s10135_s4 + $0x10] sm:$0xf] }
 0x30d   :  { %v8856_v28 = vpop.eup %8855 }
 0x30e   :  { %v2504_v10 = vmul.f32 %v8856_v28, %v8840_v7  ;;  %v2483_v46 = vpop.xlane.xlu1 %2482 }
 0x30f   :  { %8861 = vrcp.f32 %v2483_v46  ;;  %v9712_v46 = vld [vmem:[%s10135_s4 + $0x14] sm:$0xf] }
 0x310   :  { %8084 = vmatmul.mubr.msk.f32.vlgmr.msra.gmra.mrb[32].mxu0 %vm2423_vm3, %v2504_v10 }
 0x311   :  { %v8858_v47 = vpop.eup %8857  ;;  %8092 = vmatpush3.msra.mxu0 %v9597_v11  ;;  %8093 = vmatprep.mubr.msk.f32.mxu0 %vm8928_vm0, %v10172_v59 }
 0x312   :  { %v2505_v23 = vmul.f32 %v8858_v47, %v8842_v1  ;;  %v2486_v18 = vpop.xlane.xlu0 %2485  ;;  %8101 = vmatprep.subr.mxu0 %v10172_v59 }
 0x313   :  { %v2489_v63 = vpop.xlane.xlu1 %2488  ;;  %8863 = vrcp.f32 %v2486_v18  ;;  %v9723_v18 = vld [vmem:[%s10135_s4 + $0x18] sm:$0xf] }
 0x314   :  { %8865 = vrcp.f32 %v2489_v63  ;;  %8089 = vmatmul.mubr.msk.f32.vlgmr.msra.gmra.mrb[32].mxu1 %vm2423_vm3, %v2505_v23 }
 0x315   :  { %v8860_v7 = vpop.eup %8859  ;;  %8097 = vmatpush3.msra.mxu1 %v9599_v3  ;;  %8098 = vmatprep.mubr.msk.f32.mxu1 %vm8928_vm0, %v10172_v59 }
 0x316   :  { %v2506_v14 = vmul.f32 %v8860_v7, %v8844_v22  ;;  %8106 = vmatprep.subr.mxu1 %v10172_v59  ;;  %v9729_v7 = vld [vmem:[%s10135_s4 + $0x1c] sm:$0xf] }
 0x318   :  { %8094 = vmatmul.mubr.msk.f32.vlgmr.msra.gmra.mrb[34].mxu0 %vm2423_vm3, %v2506_v14 }
 0x319   :  { %v8862_v11 = vpop.eup %8861  ;;  %8102 = vmatpush3.msra.mxu0 %v9601_v41  ;;  %8103 = vmatprep.mubr.msk.f32.mxu0 %vm8928_vm0, %v10172_v59 }
 0x31a   :  { %v2507_v1 = vmul.f32 %v8862_v11, %v8846_v0  ;;  %v2492_v2 = vpop.xlane.xlu0 %2491  ;;  %8111 = vmatprep.subr.mxu0 %v10172_v59 }
 0x31b   :  { %v2495_v21 = vpop.xlane.xlu1 %2494  ;;  %8867 = vrcp.f32 %v2492_v2  ;;  %v10173_v2 = vmov 0.0|0.0  }
 0x31c   :  { %8869 = vrcp.f32 %v2495_v21  ;;  %8099 = vmatmul.mubr.msk.f32.vlgmr.msra.gmra.mrb[34].mxu1 %vm2423_vm3, %v2507_v1 }
 0x31d   :  { %v8864_v3 = vpop.eup %8863  ;;  %8107 = vmatpush3.msra.mxu1 %v9603_v51  ;;  %8108 = vmatprep.mubr.msk.f32.mxu1 %vm8928_vm0, %v10172_v59 }
 0x31e   :  { %v8866_v22 = vpop.eup %8865  ;;  %v2508_v41 = vmul.f32 %v8864_v3, %v8848_v33  ;;  %8116 = vmatprep.subr.mxu1 %v10172_v59 }
 0x31f   :  { %v2509_v48 = vmul.f32 %v8866_v22, %v8850_v29 }
 0x320   :  { %8104 = vmatmul.mubr.msk.f32.vlgmr.msra.gmra.mrb[36].mxu0 %vm2423_vm3, %v2508_v41 }
 0x321   :  { %8109 = vmatmul.mubr.msk.f32.vlgmr.msra.gmra.mrb[36].mxu1 %vm2423_vm3, %v2509_v48  ;;  %8112 = vmatpush3.msra.mxu0 %v9605_v9  ;;  %v9664_v9 = vld [vmem:[%s10135_s4] sm:$0xf]  ;;  %v9757_v48 = vld [vmem:[%s10131_s0 + $0x8] sm:$0xff] }
 0x322   :  { %8117 = vmatpush3.msra.mxu1 %v9607_v17  ;;  %8113 = vmatprep.mubr.msk.f32.mxu0 %vm8928_vm0, %v10172_v59  ;;  %v9672_v17 = vld [vmem:[%s10135_s4 + $0x4] sm:$0xf] }
 0x323   :  { %8118 = vmatprep.mubr.msk.f32.mxu1 %vm8928_vm0, %v10172_v59  ;;  %8121 = vmatprep.subr.mxu0 %v10172_v59 }
 0x324   :  { %8126 = vmatprep.subr.mxu1 %v10172_v59 }
 0x325   :  { %v8868_v51 = vpop.eup %8867 }
 0x326   :  { %v8870_v0 = vpop.eup %8869  ;;  %v2510_v33 = vmul.f32 %v8868_v51, %v8852_v58  ;;  %v9680_v58 = vld [vmem:[%s10135_s4 + $0x8] sm:$0xf] }
 0x327   :  { %v2511_v29 = vmul.f32 %v8870_v0, %v8854_v57 }
 0x328   :  { %8114 = vmatmul.mubr.msk.f32.vlgmr.msra.gmra.mrb[38].mxu0 %vm2423_vm3, %v2510_v33 }
 0x329   :  { %8119 = vmatmul.mubr.msk.f32.vlgmr.msra.gmra.mrb[38].mxu1 %vm2423_vm3, %v2511_v29  ;;  %8123 = vmatprep.mubr.msk.f32.mxu0 %vm8928_vm0, %v10172_v59 }
 0x32a   :  { %8128 = vmatprep.mubr.msk.f32.mxu1 %vm8928_vm0, %v10172_v59  ;;  %8122 = vmatpush3.msk.msra.mxu0 %vm3099_vm4, %v9664_v9 }
 0x32b   :  { %8131 = vmatprep.subr.mxu0 %v10172_v59  ;;  %8127 = vmatpush3.msk.msra.mxu1 %vm3099_vm4, %v9672_v17 }
 0x32c   :  { %8136 = vmatprep.subr.mxu1 %v10172_v59 }
 0x3e3   :  { %v2581_v57 = vpop.f32.mrb[32].mxu0 }
 0x3e4   :  { %v8085_v54 = vpop.f32.mrb[33].mxu0  ;;  %8124 = vmatmul.mubr.msk.f32.vlgmr.msra.gmra.mrb[40].mxu0 %vm1814_vm2, %v2581_v57 }
 0x3e5   :  { %8132 = vmatpush3.msk.msra.mxu0 %vm3099_vm4, %v9680_v58  ;;  %8133 = vmatprep.mubr.msk.f32.mxu0 %vm8928_vm0, %v10172_v59 }
 0x3e6   :  { %8141 = vmatprep.subr.mxu0 %v10172_v59 }
 0x3e7   :  { %v2654_v40 = vpop.f32.mrb[32].mxu1 }
 0x3e8   :  { %v8090_v36 = vpop.f32.mrb[33].mxu1  ;;  %8129 = vmatmul.mubr.msk.f32.vlgmr.msra.gmra.mrb[40].mxu1 %vm1814_vm2, %v2654_v40 }
 0x3e9   :  { %8137 = vmatpush3.msk.msra.mxu1 %vm3099_vm4, %v9690_v30  ;;  %8138 = vmatprep.mubr.msk.f32.mxu1 %vm8928_vm0, %v10172_v59 }
 0x3ea   :  { %8146 = vmatprep.subr.mxu1 %v10172_v59 }
 0x3eb   :  { %v2727_v28 = vpop.f32.mrb[34].mxu0 }
 0x3ec   :  { %v8095_v10 = vpop.f32.mrb[35].mxu0  ;;  %8134 = vmatmul.mubr.msk.f32.vlgmr.msra.gmra.mrb[42].mxu0 %vm1814_vm2, %v2727_v28 }
 0x3ed   :  { %8142 = vmatpush3.msk.msra.mxu0 %vm3099_vm4, %v9702_v39  ;;  %8143 = vmatprep.mubr.msk.f32.mxu0 %vm8928_vm0, %v10172_v59 }
 0x3ee   :  { %8151 = vmatprep.subr.mxu0 %v10172_v59 }
 0x3ef   :  { %v2800_v47 = vpop.f32.mrb[34].mxu1 }
 0x3f0   :  { %v8100_v23 = vpop.f32.mrb[35].mxu1  ;;  %8139 = vmatmul.mubr.msk.f32.vlgmr.msra.gmra.mrb[42].mxu1 %vm1814_vm2, %v2800_v47 }
 0x3f1   :  { %8147 = vmatpush3.msk.msra.mxu1 %vm3099_vm4, %v9712_v46  ;;  %8148 = vmatprep.mubr.msk.f32.mxu1 %vm8928_vm0, %v10172_v59  ;;  %v9956_v23 = vld [vmem:[%s10136_s5] ss:$0 sm:$0xff]  ;;  %s8930_s5 = smov [#allocation2]  }
 0x3f2   :  { %8156 = vmatprep.subr.mxu1 %v10172_v59  ;;  %s7300_s30 = sshll.u32 %s8930_s5, 4  ;;  %s7301_s30 = int_to_ptr.vmem [resolvable:$true] %s7300_s30 }
 0x3f3   :  { %v2873_v63 = vpop.f32.mrb[36].mxu0  ;;  %s8903_s7 = scalar_lea.vmem %s7301_s30, 256  ;;  %p8908_p1 = scmp.lt.s32.totalorder %s7301_s30, %s7301_s30 }
 0x3f4   :  { %v2946_v14 = vpop.f32.mrb[36].mxu1  ;;  %v8105_v11 = vpop.f32.mrb[37].mxu0  ;;  %8144 = vmatmul.mubr.msk.f32.vlgmr.msra.gmra.mrb[44].mxu0 %vm1814_vm2, %v2873_v63  ;;  %p8904_p0 = scmp.ne.s32.totalorder %s7301_s30, %s8903_s7  ;;  %p8909_p2 = scmp.lt.s32.totalorder %s8903_s7, %s8903_s7 }
 0x3f5   :  { %v8110_v1 = vpop.f32.mrb[37].mxu1  ;;  %8149 = vmatmul.mubr.msk.f32.vlgmr.msra.gmra.mrb[44].mxu1 %vm1814_vm2, %v2946_v14  ;;  %8152 = vmatpush3.msk.msra.mxu0 %vm3099_vm4, %v9723_v18 }
 0x3f6   :  { %8157 = vmatpush3.msk.msra.mxu1 %vm3099_vm4, %v9729_v7  ;;  %8153 = vmatprep.mubr.msk.f32.mxu0 %vm8928_vm0, %v10172_v59  ;;  %p8910_p3 = por %p8909_p2, %p8908_p1 }
 0x3f7   :  { %8158 = vmatprep.mubr.msk.f32.mxu1 %vm8928_vm0, %v10172_v59  ;;  %8689 = vmatprep.subr.bf16.mxu0 %v10173_v2 }
 0x3f8   :  { %8695 = vmatprep.subr.bf16.mxu1 %v10173_v2  ;;  %p8911_p4 = pnand %p8910_p3, %p8904_p0 }
 0x3fb   :  { %v3019_v21 = vpop.f32.mrb[38].mxu0 }
 0x3fc   :  { %v3092_v3 = vpop.f32.mrb[38].mxu1  ;;  %v8115_v22 = vpop.f32.mrb[39].mxu0  ;;  %8154 = vmatmul.mubr.msk.f32.vlgmr.msra.gmra.mrb[46].mxu0 %vm1814_vm2, %v3019_v21 }
 0x3fd   :  { %v8120_v41 = vpop.f32.mrb[39].mxu1  ;;  %8159 = vmatmul.mubr.msk.f32.vlgmr.msra.gmra.mrb[46].mxu1 %vm1814_vm2, %v3092_v3  ;;  %8691 = vmatpush3.bf16.msra.mxu0 %v8979_v4  ;;  %v10174_v4 = vld [vmem:[#allocation5_spill] sm:$0xff] }
 0x3fe   :  { %8697 = vmatpush3.bf16.msra.mxu1 %v8990_v8  ;;  %8692 = vmatprep.subr.bf16.mxu0 %v10173_v2  ;;  %v10175_v8 = vld [vmem:[#allocation6_spill] sm:$0xff] }
 0x3ff   :  { %8698 = vmatprep.subr.bf16.mxu1 %v10173_v2  ;;  %8169 = vmatprep.mubr.msk.f32.mxu0 %vm8928_vm0, %v10172_v59 }
 0x400   :  { %8180 = vmatprep.mubr.msk.f32.mxu1 %vm8928_vm0, %v10172_v59 }
 0x401   :  { %8694 = vmatpush3.bf16.msra.mxu0 %v9003_v12  ;;  %v10176_v12 = vld [vmem:[#allocation7_spill] sm:$0xff] }
 0x402   :  { %8700 = vmatpush3.bf16.msra.mxu1 %v9007_v13  ;;  %8701 = vmatprep.subr.bf16.mxu0 %v10173_v2  ;;  %v10177_v13 = vld [vmem:[#allocation8_spill] sm:$0xff] }
 0x403   :  { %8707 = vmatprep.subr.bf16.mxu1 %v10173_v2 }
 0x404   :  { %8170 = vmatmul.mubr.msk.f32.vlgmr.msra.gmra.mrb[48].mxu0 %vm130_vm1, %v9757_v48 }
 0x405   :  { %8181 = vmatmul.mubr.msk.f32.vlgmr.msra.gmra.mrb[48].mxu1 %vm130_vm1, %v9757_v48  ;;  %8703 = vmatpush3.bf16.msra.mxu0 %v9028_v19  ;;  %v10178_v19 = vld [vmem:[#allocation9_spill] sm:$0xff] }
 0x406   :  { %8709 = vmatpush3.bf16.msra.mxu1 %v9032_v20  ;;  %8704 = vmatprep.subr.bf16.mxu0 %v10173_v2  ;;  %v10179_v20 = vld [vmem:[#allocation10_spill] sm:$0xff] }
 0x407   :  { %8710 = vmatprep.subr.bf16.mxu1 %v10173_v2  ;;  %8191 = vmatprep.mubr.msk.f32.mxu0 %vm8928_vm0, %v10172_v59 }
 0x408   :  { %8202 = vmatprep.mubr.msk.f32.mxu1 %vm8928_vm0, %v10172_v59 }
 0x409   :  { %8706 = vmatpush3.bf16.msra.mxu0 %v9052_v25  ;;  %v10180_v25 = vld [vmem:[#allocation11_spill] sm:$0xff] }
 0x40a   :  { %8712 = vmatpush3.bf16.msra.mxu1 %v9056_v26  ;;  %8713 = vmatprep.subr.bf16.mxu0 %v10173_v2  ;;  %v10181_v26 = vld [vmem:[#allocation12_spill] sm:$0xff] }
 0x40b   :  { %8719 = vmatprep.subr.bf16.mxu1 %v10173_v2 }
 0x40c   :  { %8192 = vmatmul.mubr.msk.f32.vlgmr.msra.gmra.mrb[50].mxu0 %vm130_vm1, %v9757_v48 }
 0x40d   :  { %8203 = vmatmul.mubr.msk.f32.vlgmr.msra.gmra.mrb[50].mxu1 %vm130_vm1, %v9757_v48  ;;  %8715 = vmatpush3.bf16.msra.mxu0 %v9076_v31  ;;  %v10182_v31 = vld [vmem:[#allocation13_spill] sm:$0xff] }
 0x40e   :  { %8721 = vmatpush3.bf16.msra.mxu1 %v9080_v32  ;;  %8716 = vmatprep.subr.bf16.mxu0 %v10173_v2  ;;  %v10183_v32 = vld [vmem:[#allocation14_spill] sm:$0xff] }
 0x40f   :  { %8722 = vmatprep.subr.bf16.mxu1 %v10173_v2  ;;  %8213 = vmatprep.mubr.msk.f32.mxu0 %vm8928_vm0, %v10172_v59 }
 0x410   :  { %8224 = vmatprep.mubr.msk.f32.mxu1 %vm8928_vm0, %v10172_v59 }
 0x411   :  { %8718 = vmatpush3.bf16.msra.mxu0 %v9100_v37  ;;  %v10184_v37 = vld [vmem:[#allocation15_spill] sm:$0xff] }
 0x412   :  { %8724 = vmatpush3.bf16.msra.mxu1 %v9104_v38  ;;  %8725 = vmatprep.subr.bf16.mxu0 %v10173_v2  ;;  %v10185_v38 = vld [vmem:[#allocation16_spill] sm:$0xff] }
 0x413   :  { %8731 = vmatprep.subr.bf16.mxu1 %v10173_v2 }
 0x414   :  { %8214 = vmatmul.mubr.msk.f32.vlgmr.msra.gmra.mrb[52].mxu0 %vm130_vm1, %v9757_v48 }
 0x415   :  { %8225 = vmatmul.mubr.msk.f32.vlgmr.msra.gmra.mrb[52].mxu1 %vm130_vm1, %v9757_v48  ;;  %8727 = vmatpush3.bf16.msra.mxu0 %v9124_v43  ;;  %v10186_v43 = vld [vmem:[#allocation17_spill] sm:$0xff] }
 0x416   :  { %8733 = vmatpush3.bf16.msra.mxu1 %v9128_v44  ;;  %8728 = vmatprep.subr.bf16.mxu0 %v10173_v2  ;;  %v10187_v44 = vld [vmem:[#allocation18_spill] sm:$0xff] }
 0x417   :  { %8734 = vmatprep.subr.bf16.mxu1 %v10173_v2  ;;  %8235 = vmatprep.mubr.msk.f32.mxu0 %vm8928_vm0, %v10172_v59 }
 0x418   :  { %8246 = vmatprep.mubr.msk.f32.mxu1 %vm8928_vm0, %v10172_v59 }
 0x419   :  { %8730 = vmatpush3.bf16.msra.mxu0 %v9148_v49  ;;  %v10188_v49 = vld [vmem:[#allocation19_spill] sm:$0xff] }
 0x41a   :  { %8736 = vmatpush3.bf16.msra.mxu1 %v9152_v50  ;;  %8737 = vmatprep.subr.bf16.mxu0 %v10173_v2 }
 0x41b   :  { %8743 = vmatprep.subr.bf16.mxu1 %v10173_v2 }
 0x41c   :  { %8236 = vmatmul.mubr.msk.f32.vlgmr.msra.gmra.mrb[54].mxu0 %vm130_vm1, %v9757_v48 }
 0x41d   :  { %8247 = vmatmul.mubr.msk.f32.vlgmr.msra.gmra.mrb[54].mxu1 %vm130_vm1, %v9757_v48  ;;  %8739 = vmatpush3.bf16.msra.mxu0 %v9172_v55 }
 0x41e   :  { %8745 = vmatpush3.bf16.msra.mxu1 %v9176_v56  ;;  %8740 = vmatprep.subr.bf16.mxu0 %v10173_v2 }
 0x41f   :  { %8746 = vmatprep.subr.bf16.mxu1 %v10173_v2  ;;  %8257 = vmatprep.mubr.msk.f32.mxu0 %vm8928_vm0, %v10172_v59 }
 0x420   :  { %8268 = vmatprep.mubr.msk.f32.mxu1 %vm8928_vm0, %v10172_v59 }
 0x421   :  { %8742 = vmatpush3.bf16.msra.mxu0 %v9196_v61 }
 0x422   :  { %8748 = vmatpush3.bf16.msra.mxu1 %v9200_v62  ;;  %8749 = vmatprep.subr.bf16.mxu0 %v10173_v2 }
 0x423   :  { %8755 = vmatprep.subr.bf16.mxu1 %v10173_v2 }
 0x424   :  { %8258 = vmatmul.mubr.msk.f32.vlgmr.msra.gmra.mrb[56].mxu0 %vm130_vm1, %v9757_v48 }
 0x425   :  { %8269 = vmatmul.mubr.msk.f32.vlgmr.msra.gmra.mrb[56].mxu1 %vm130_vm1, %v9757_v48  ;;  %8751 = vmatpush3.bf16.msra.mxu0 %v9220_v5 }
 0x426   :  { %8757 = vmatpush3.bf16.msra.mxu1 %v9224_v6  ;;  %8752 = vmatprep.subr.bf16.mxu0 %v10173_v2 }
 0x427   :  { %8758 = vmatprep.subr.bf16.mxu1 %v10173_v2  ;;  %8279 = vmatprep.mubr.msk.f32.mxu0 %vm8928_vm0, %v10172_v59 }
 0x428   :  { %8290 = vmatprep.mubr.msk.f32.mxu1 %vm8928_vm0, %v10172_v59 }
 0x429   :  { %8754 = vmatpush3.bf16.msra.mxu0 %v9244_v15 }
 0x42a   :  { %8760 = vmatpush3.bf16.msra.mxu1 %v9248_v16  ;;  %8761 = vmatprep.subr.bf16.mxu0 %v10173_v2 }
 0x42b   :  { %8767 = vmatprep.subr.bf16.mxu1 %v10173_v2 }
 0x42c   :  { %8280 = vmatmul.mubr.msk.f32.vlgmr.msra.gmra.mrb[58].mxu0 %vm130_vm1, %v9757_v48 }
 0x42d   :  { %8291 = vmatmul.mubr.msk.f32.vlgmr.msra.gmra.mrb[58].mxu1 %vm130_vm1, %v9757_v48  ;;  %8763 = vmatpush3.bf16.msra.mxu0 %v9268_v24 }
 0x42e   :  { %8769 = vmatpush3.bf16.msra.mxu1 %v9272_v27  ;;  %8764 = vmatprep.subr.bf16.mxu0 %v10173_v2 }
 0x42f   :  { %8770 = vmatprep.subr.bf16.mxu1 %v10173_v2  ;;  %8301 = vmatprep.mubr.msk.f32.mxu0 %vm8928_vm0, %v10172_v59 }
 0x430   :  { %8312 = vmatprep.mubr.msk.f32.mxu1 %vm8928_vm0, %v10172_v59 }
 0x431   :  { %8766 = vmatpush3.bf16.msra.mxu0 %v9292_v34 }
 0x432   :  { %8772 = vmatpush3.bf16.msra.mxu1 %v9296_v35  ;;  %8773 = vmatprep.subr.bf16.mxu0 %v10173_v2 }
 0x433   :  { %8779 = vmatprep.subr.bf16.mxu1 %v10173_v2 }
 0x434   :  { %8302 = vmatmul.mubr.msk.f32.vlgmr.msra.gmra.mrb[60].mxu0 %vm130_vm1, %v9757_v48 }
 0x435   :  { %8313 = vmatmul.mubr.msk.f32.vlgmr.msra.gmra.mrb[60].mxu1 %vm130_vm1, %v9757_v48  ;;  %8775 = vmatpush3.bf16.msra.mxu0 %v9316_v42 }
 0x436   :  { %8781 = vmatpush3.bf16.msra.mxu1 %v9320_v45  ;;  %8776 = vmatprep.subr.bf16.mxu0 %v10173_v2 }
 0x437   :  { %8782 = vmatprep.subr.bf16.mxu1 %v10173_v2  ;;  %8323 = vmatprep.mubr.msk.f32.mxu0 %vm8928_vm0, %v10172_v59 }
 0x438   :  { %8334 = vmatprep.mubr.msk.f32.mxu1 %vm8928_vm0, %v10172_v59 }
 0x439   :  { %8778 = vmatpush3.bf16.msra.mxu0 %v9340_v52 }
 0x43a   :  { %8784 = vmatpush3.bf16.msra.mxu1 %v9344_v53  ;;  %8785 = vmatprep.subr.bf16.mxu0 %v10173_v2 }
 0x43b   :  { %8791 = vmatprep.subr.bf16.mxu1 %v10173_v2 }
 0x43c   :  { %8324 = vmatmul.mubr.msk.f32.vlgmr.msra.gmra.mrb[62].mxu0 %vm130_vm1, %v9757_v48 }
 0x43d   :  { %8335 = vmatmul.mubr.msk.f32.vlgmr.msra.gmra.mrb[62].mxu1 %vm130_vm1, %v9757_v48  ;;  %8787 = vmatpush3.bf16.msra.mxu0 %v9364_v60 }
 0x43e   :  { %8793 = vmatpush3.bf16.msra.mxu1 %v10174_v4  ;;  %8788 = vmatprep.subr.bf16.mxu0 %v10173_v2 }
 0x43f   :  { %8794 = vmatprep.subr.bf16.mxu1 %v10173_v2  ;;  %8345 = vmatprep.mubr.msk.f32.mxu0 %vm8928_vm0, %v10172_v59 }
 0x440   :  { %8356 = vmatprep.mubr.msk.f32.mxu1 %vm8928_vm0, %v10172_v59 }
 0x441   :  { %8790 = vmatpush3.bf16.msra.mxu0 %v10175_v8 }
 0x442   :  { %8796 = vmatpush3.bf16.msra.mxu1 %v10176_v12  ;;  %8797 = vmatprep.subr.bf16.mxu0 %v10173_v2 }
 0x443   :  { %8803 = vmatprep.subr.bf16.mxu1 %v10173_v2 }
 0x444   :  { %8346 = vmatmul.mubr.msk.f32.vlgmr.msra.gmra.mrb[64].mxu0 %vm130_vm1, %v9757_v48 }
 0x445   :  { %8357 = vmatmul.mubr.msk.f32.vlgmr.msra.gmra.mrb[64].mxu1 %vm130_vm1, %v9757_v48  ;;  %8799 = vmatpush3.bf16.msra.mxu0 %v10177_v13 }
 0x446   :  { %8805 = vmatpush3.bf16.msra.mxu1 %v10178_v19  ;;  %8800 = vmatprep.subr.bf16.mxu0 %v10173_v2 }
 0x447   :  { %8806 = vmatprep.subr.bf16.mxu1 %v10173_v2  ;;  %8367 = vmatprep.mubr.msk.f32.mxu0 %vm8928_vm0, %v10172_v59 }
 0x448   :  { %8378 = vmatprep.mubr.msk.f32.mxu1 %vm8928_vm0, %v10172_v59 }
 0x449   :  { %8802 = vmatpush3.bf16.msra.mxu0 %v10179_v20 }
 0x44a   :  { %8808 = vmatpush3.bf16.msra.mxu1 %v10180_v25  ;;  %8809 = vmatprep.subr.bf16.mxu0 %v10173_v2 }
 0x44b   :  { %8815 = vmatprep.subr.bf16.mxu1 %v10173_v2 }
 0x44c   :  { %8368 = vmatmul.mubr.msk.f32.vlgmr.msra.gmra.mrb[66].mxu0 %vm130_vm1, %v9757_v48 }
 0x44d   :  { %8379 = vmatmul.mubr.msk.f32.vlgmr.msra.gmra.mrb[66].mxu1 %vm130_vm1, %v9757_v48  ;;  %8811 = vmatpush3.bf16.msra.mxu0 %v10181_v26 }
 0x44e   :  { %8817 = vmatpush3.bf16.msra.mxu1 %v10182_v31  ;;  %8812 = vmatprep.subr.bf16.mxu0 %v10173_v2 }
 0x44f   :  { %8818 = vmatprep.subr.bf16.mxu1 %v10173_v2  ;;  %8389 = vmatprep.mubr.msk.f32.mxu0 %vm8928_vm0, %v10172_v59 }
 0x450   :  { %8400 = vmatprep.mubr.msk.f32.mxu1 %vm8928_vm0, %v10172_v59 }
 0x451   :  { %8814 = vmatpush3.bf16.msra.mxu0 %v10183_v32 }
 0x452   :  { %8820 = vmatpush3.bf16.msra.mxu1 %v10184_v37  ;;  %8821 = vmatprep.subr.bf16.mxu0 %v10173_v2 }
 0x453   :  { %8827 = vmatprep.subr.bf16.mxu1 %v10173_v2 }
 0x454   :  { %8390 = vmatmul.mubr.msk.f32.vlgmr.msra.gmra.mrb[68].mxu0 %vm130_vm1, %v9757_v48 }
 0x455   :  { %8401 = vmatmul.mubr.msk.f32.vlgmr.msra.gmra.mrb[68].mxu1 %vm130_vm1, %v9757_v48  ;;  %8823 = vmatpush3.bf16.msra.mxu0 %v10185_v38 }
 0x456   :  { %8829 = vmatpush3.bf16.msra.mxu1 %v10186_v43  ;;  %8824 = vmatprep.subr.bf16.mxu0 %v10173_v2 }
 0x457   :  { %8830 = vmatprep.subr.bf16.mxu1 %v10173_v2  ;;  %8411 = vmatprep.mubr.msk.f32.mxu0 %vm8928_vm0, %v10172_v59 }
 0x458   :  { %8422 = vmatprep.mubr.msk.f32.mxu1 %vm8928_vm0, %v10172_v59 }
 0x459   :  { %8826 = vmatpush3.bf16.msra.mxu0 %v10187_v44 }
 0x45a   :  { %8832 = vmatpush3.bf16.msra.mxu1 %v10188_v49  ;;  %8425 = vmatprep.subr.mxu0 %v10172_v59 }
 0x45b   :  { %8430 = vmatprep.subr.mxu1 %v10172_v59 }
 0x45c   :  { %8412 = vmatmul.mubr.msk.f32.vlgmr.msra.gmra.mrb[70].mxu0 %vm130_vm1, %v9757_v48 }
 0x45d   :  { %8423 = vmatmul.mubr.msk.f32.vlgmr.msra.gmra.mrb[70].mxu1 %vm130_vm1, %v9757_v48  ;;  %8427 = vmatprep.mubr.msk.f32.mxu0 %vm8928_vm0, %v10172_v59 }
 0x45e   :  { %8432 = vmatprep.mubr.msk.f32.mxu1 %vm8928_vm0, %v10172_v59 }
 0x4b7   :  { %v3169_v50 = vpop.f32.mrb[40].mxu0 }
 0x4b8   :  { %v8125_v55 = vpop.f32.mrb[41].mxu0  ;;  %v3705_v61 = vsel %vm130_vm1, %v3169_v50, 0.0 }
 0x4bb   :  { %v3245_v56 = vpop.f32.mrb[40].mxu1 }
 0x4bc   :  { %v3706_v62 = vsel %vm130_vm1, %v3245_v56, 0.0  ;;  %v8130_v5 = vpop.f32.mrb[41].mxu1 }
 0x4bd   :  { %v3707_v6 = vadd.f32 %v3706_v62, %v3705_v61 }
 0x4bf   :  { %v3321_v15 = vpop.f32.mrb[42].mxu0 }
 0x4c0   :  { %v3708_v16 = vsel %vm130_vm1, %v3321_v15, 0.0  ;;  %v8135_v24 = vpop.f32.mrb[43].mxu0 }
 0x4c1   :  { %v3709_v27 = vadd.f32 %v3708_v16, %v3707_v6 }
 0x4c3   :  { %v3397_v34 = vpop.f32.mrb[42].mxu1 }
 0x4c4   :  { %v3710_v35 = vsel %vm130_vm1, %v3397_v34, 0.0  ;;  %v8140_v42 = vpop.f32.mrb[43].mxu1 }
 0x4c5   :  { %v3711_v45 = vadd.f32 %v3710_v35, %v3709_v27 }
 0x4c7   :  { %v3473_v52 = vpop.f32.mrb[44].mxu0 }
 0x4c8   :  { %v3712_v53 = vsel %vm130_vm1, %v3473_v52, 0.0  ;;  %v3549_v60 = vpop.f32.mrb[44].mxu1  ;;  %v8145_v51 = vpop.f32.mrb[45].mxu0 }
 0x4c9   :  { %v3713_v0 = vadd.f32 %v3712_v53, %v3711_v45  ;;  %v8150_v33 = vpop.f32.mrb[45].mxu1  ;;  %v3714_v29 = vsel %vm130_vm1, %v3549_v60, 0.0 }
 0x4cb   :  { %v3715_v57 = vadd.f32 %v3714_v29, %v3713_v0 }
 0x4cf   :  { %v3625_v54 = vpop.f32.mrb[46].mxu0 }
 0x4d0   :  { %v3716_v40 = vsel %vm130_vm1, %v3625_v54, 0.0  ;;  %v3701_v36 = vpop.f32.mrb[46].mxu1  ;;  %v8155_v28 = vpop.f32.mrb[47].mxu0 }
 0x4d1   :  { %v3717_v10 = vadd.f32 %v3716_v40, %v3715_v57  ;;  %v8160_v47 = vpop.f32.mrb[47].mxu1  ;;  %v3718_v63 = vsel %vm130_vm1, %v3701_v36, 0.0 }
 0x4d3   :  { %v3719_v14 = vadd.f32 %v3718_v63, %v3717_v10 }
 0x4d5   :  { %v3726_v11 = vadd.f32 %v9956_v23, %v3719_v14 }
 0x4d7   :  { %3727 = vst.msk [vmem:[#allocation2] sm:$0xff] %vm130_vm1, %v3726_v11  ;;  %v3799_v1 = vpop.f32.mrb[48].mxu0 }
 0x4d8   :  { %v8171_v2 = vpop.f32.mrb[49].mxu0  ;;  %v3869_v21 = vpop.f32.mrb[48].mxu1 }
 0x4d9   :  { %v8182_v3 = vpop.f32.mrb[49].mxu1 }
 0x4df   :  { %v3939_v22 = vpop.f32.mrb[50].mxu0 }
 0x4e0   :  { %v8193_v41 = vpop.f32.mrb[51].mxu0  ;;  %v4009_v48 = vpop.f32.mrb[50].mxu1 }
 0x4e1   :  { %v8204_v4 = vpop.f32.mrb[51].mxu1 }
 0x4e7   :  { %v4079_v8 = vpop.f32.mrb[52].mxu0 }
 0x4e8   :  { %v8215_v12 = vpop.f32.mrb[53].mxu0  ;;  %v4149_v13 = vpop.f32.mrb[52].mxu1 }
 0x4e9   :  { %v8226_v19 = vpop.f32.mrb[53].mxu1 }
 0x4ef   :  { %v4219_v20 = vpop.f32.mrb[54].mxu0 }
 0x4f0   :  { %v8237_v25 = vpop.f32.mrb[55].mxu0  ;;  %v4289_v26 = vpop.f32.mrb[54].mxu1 }
 0x4f1   :  { %v8248_v31 = vpop.f32.mrb[55].mxu1 }
 0x4f7   :  { %v4359_v32 = vpop.f32.mrb[56].mxu0 }
 0x4f8   :  { %v4429_v37 = vpop.f32.mrb[56].mxu1  ;;  %v8259_v38 = vpop.f32.mrb[57].mxu0  ;;  %8426 = vmatpush3.xpose.msk.msra.mxu0 %vm1814_vm2, %v4359_v32 }
 0x4f9   :  { %8431 = vmatpush3.xpose.msk.msra.mxu1 %vm1814_vm2, %v4429_v37  ;;  %v8270_v43 = vpop.f32.mrb[57].mxu1  ;;  %8435 = vmatprep.subr.mxu0 %v10172_v59 }
 0x4fa   :  { %8440 = vmatprep.subr.mxu1 %v10172_v59 }
 0x4fb   :  { %8428 = vmatmul.mubr.msk.f32.vlgmr.msra.gmra.mrb[72].mxu0 %vm1814_vm2, %v3799_v1 }
 0x4fc   :  { %8433 = vmatmul.mubr.msk.f32.vlgmr.msra.gmra.mrb[72].mxu1 %vm1814_vm2, %v3869_v21  ;;  %8437 = vmatprep.mubr.msk.f32.mxu0 %vm8928_vm0, %v10172_v59 }
 0x4fd   :  { %8442 = vmatprep.mubr.msk.f32.mxu1 %vm8928_vm0, %v10172_v59 }
 0x4ff   :  { %v4499_v44 = vpop.f32.mrb[58].mxu0 }
 0x500   :  { %v4569_v49 = vpop.f32.mrb[58].mxu1  ;;  %v8281_v50 = vpop.f32.mrb[59].mxu0  ;;  %8436 = vmatpush3.xpose.msk.msra.mxu0 %vm1814_vm2, %v4499_v44 }
 0x501   :  { %8441 = vmatpush3.xpose.msk.msra.mxu1 %vm1814_vm2, %v4569_v49  ;;  %v8292_v55 = vpop.f32.mrb[59].mxu1  ;;  %8445 = vmatprep.subr.mxu0 %v10172_v59 }
 0x502   :  { %8450 = vmatprep.subr.mxu1 %v10172_v59 }
 0x503   :  { %8438 = vmatmul.mubr.msk.f32.vlgmr.msra.gmra.mrb[74].mxu0 %vm1814_vm2, %v3939_v22 }
 0x504   :  { %8443 = vmatmul.mubr.msk.f32.vlgmr.msra.gmra.mrb[74].mxu1 %vm1814_vm2, %v4009_v48  ;;  %8447 = vmatprep.mubr.msk.f32.mxu0 %vm8928_vm0, %v10172_v59 }
 0x505   :  { %8452 = vmatprep.mubr.msk.f32.mxu1 %vm8928_vm0, %v10172_v59 }
 0x507   :  { %v4639_v56 = vpop.f32.mrb[60].mxu0 }
 0x508   :  { %v4709_v61 = vpop.f32.mrb[60].mxu1  ;;  %v8303_v62 = vpop.f32.mrb[61].mxu0  ;;  %8446 = vmatpush3.xpose.msk.msra.mxu0 %vm1814_vm2, %v4639_v56 }
 0x509   :  { %8451 = vmatpush3.xpose.msk.msra.mxu1 %vm1814_vm2, %v4709_v61  ;;  %v8314_v5 = vpop.f32.mrb[61].mxu1  ;;  %8455 = vmatprep.subr.mxu0 %v10172_v59 }
 0x50a   :  { %8460 = vmatprep.subr.mxu1 %v10172_v59 }
 0x50b   :  { %8448 = vmatmul.mubr.msk.f32.vlgmr.msra.gmra.mrb[76].mxu0 %vm1814_vm2, %v4079_v8 }
 0x50c   :  { %8453 = vmatmul.mubr.msk.f32.vlgmr.msra.gmra.mrb[76].mxu1 %vm1814_vm2, %v4149_v13  ;;  %8457 = vmatprep.mubr.msk.f32.mxu0 %vm8928_vm0, %v10172_v59 }
 0x50d   :  { %8462 = vmatprep.mubr.msk.f32.mxu1 %vm8928_vm0, %v10172_v59 }
 0x50f   :  { %v4779_v6 = vpop.f32.mrb[62].mxu0 }
 0x510   :  { %v4849_v15 = vpop.f32.mrb[62].mxu1  ;;  %v8325_v16 = vpop.f32.mrb[63].mxu0  ;;  %8456 = vmatpush3.xpose.msk.msra.mxu0 %vm1814_vm2, %v4779_v6 }
 0x511   :  { %8461 = vmatpush3.xpose.msk.msra.mxu1 %vm1814_vm2, %v4849_v15  ;;  %v8336_v24 = vpop.f32.mrb[63].mxu1  ;;  %8465 = vmatprep.subr.mxu0 %v10172_v59 }
 0x512   :  { %8470 = vmatprep.subr.mxu1 %v10172_v59 }
 0x513   :  { %8458 = vmatmul.mubr.msk.f32.vlgmr.msra.gmra.mrb[78].mxu0 %vm1814_vm2, %v4219_v20 }
 0x514   :  { %8463 = vmatmul.mubr.msk.f32.vlgmr.msra.gmra.mrb[78].mxu1 %vm1814_vm2, %v4289_v26  ;;  %8467 = vmatprep.mubr.msk.f32.mxu0 %vm8928_vm0, %v10172_v59 }
 0x515   :  { %8472 = vmatprep.mubr.msk.f32.mxu1 %vm8928_vm0, %v10172_v59 }
 0x517   :  { %v4919_v27 = vpop.f32.mrb[64].mxu0 }
 0x518   :  { %v8347_v34 = vpop.f32.mrb[65].mxu0  ;;  %v4989_v35 = vpop.f32.mrb[64].mxu1  ;;  %8466 = vmatpush3.msra.mxu0 %v4919_v27 }
 0x519   :  { %v8358_v42 = vpop.f32.mrb[65].mxu1  ;;  %8471 = vmatpush3.msra.mxu1 %v4989_v35  ;;  %8475 = vmatprep.subr.mxu0 %v10172_v59 }
 0x51a   :  { %8480 = vmatprep.subr.mxu1 %v10172_v59 }
 0x51f   :  { %v10003_v45 = vpop.f32.mrb[66].mxu0 }
 0x520   :  { %v8369_v52 = vpop.f32.mrb[67].mxu0  ;;  %v10005_v53 = vpop.f32.mrb[66].mxu1 }
 0x521   :  { %v8380_v60 = vpop.f32.mrb[67].mxu1 }
 0x527   :  { %v10007_v51 = vpop.f32.mrb[68].mxu0 }
 0x528   :  { %v8391_v0 = vpop.f32.mrb[69].mxu0  ;;  %v10009_v33 = vpop.f32.mrb[68].mxu1 }
 0x529   :  { %v8402_v29 = vpop.f32.mrb[69].mxu1 }
 0x52f   :  { %v10011_v57 = vpop.f32.mrb[70].mxu0 }
 0x530   :  { %v10013_v54 = vpop.f32.mrb[70].mxu1  ;;  %v8413_v40 = vpop.f32.mrb[71].mxu0 }
 0x531   :  { %v8424_v36 = vpop.f32.mrb[71].mxu1 }
 0x5ce   :  { %v5485_v28 = vpop.f32.mrb[72].mxu0 }
 0x5cf   :  { %v5561_v10 = vpop.f32.mrb[72].mxu1  ;;  %v8429_v47 = vpop.f32.mrb[73].mxu0  ;;  %v6021_v63 = vsel %vm2423_vm3, %v5485_v28, -inf }
 0x5d0   :  { %v8434_v14 = vpop.f32.mrb[73].mxu1  ;;  %v6024_v11 = vsel %vm2423_vm3, %v5561_v10, -inf  ;;  %6022 = vmax.xlane.f32.xlu0 %v6021_v63 }
 0x5d1   :  { %6025 = vmax.xlane.f32.xlu1 %v6024_v11 }
 0x5d6   :  { %v5637_v1 = vpop.f32.mrb[74].mxu0 }
 0x5d7   :  { %v5713_v2 = vpop.f32.mrb[74].mxu1  ;;  %v8439_v21 = vpop.f32.mrb[75].mxu0  ;;  %v6027_v3 = vsel %vm2423_vm3, %v5637_v1, -inf }
 0x5d8   :  { %v8444_v22 = vpop.f32.mrb[75].mxu1  ;;  %v6030_v41 = vsel %vm2423_vm3, %v5713_v2, -inf  ;;  %6028 = vmax.xlane.f32.xlu0 %v6027_v3 }
 0x5d9   :  { %6031 = vmax.xlane.f32.xlu1 %v6030_v41 }
 0x5de   :  { %v5789_v48 = vpop.f32.mrb[76].mxu0 }
 0x5df   :  { %v5865_v4 = vpop.f32.mrb[76].mxu1  ;;  %v8449_v8 = vpop.f32.mrb[77].mxu0  ;;  %v6033_v12 = vsel %vm2423_vm3, %v5789_v48, -inf }
 0x5e0   :  { %v8454_v13 = vpop.f32.mrb[77].mxu1  ;;  %v6036_v19 = vsel %vm2423_vm3, %v5865_v4, -inf  ;;  %6034 = vmax.xlane.f32.xlu0 %v6033_v12 }
 0x5e1   :  { %6037 = vmax.xlane.f32.xlu1 %v6036_v19 }
 0x5e6   :  { %v5941_v20 = vpop.f32.mrb[78].mxu0 }
 0x5e7   :  { %v6017_v25 = vpop.f32.mrb[78].mxu1  ;;  %v8459_v26 = vpop.f32.mrb[79].mxu0  ;;  %v6039_v31 = vsel %vm2423_vm3, %v5941_v20, -inf }
 0x5e8   :  { %v8464_v32 = vpop.f32.mrb[79].mxu1  ;;  %v6042_v37 = vsel %vm2423_vm3, %v6017_v25, -inf  ;;  %6040 = vmax.xlane.f32.xlu0 %v6039_v31 }
 0x5e9   :  { %6043 = vmax.xlane.f32.xlu1 %v6042_v37 }
 0x65d   :  { %v6023_v38 = vpop.xlane.xlu0 %6022 }
 0x65e   :  { %v6026_v43 = vpop.xlane.xlu1 %6025  ;;  %v6045_v44 = vsub.f32 %v5485_v28, %v6023_v38 }
 0x65f   :  { %v6046_v49 = vsub.f32 %v5561_v10, %v6026_v43 }
 0x660   :  { %v6053_v50 = vmul.f32 1.442695, %v6045_v44 }
 0x661   :  { %v6055_v55 = vmul.f32 1.442695, %v6046_v49 }
 0x662   :  { %8871 = vpow2.f32 %v6053_v50 }
 0x663   :  { %8873 = vpow2.f32 %v6055_v55 }
 0x665   :  { %v6029_v56 = vpop.xlane.xlu0 %6028 }
 0x666   :  { %v6032_v61 = vpop.xlane.xlu1 %6031  ;;  %v6047_v62 = vsub.f32 %v5637_v1, %v6029_v56 }
 0x667   :  { %v6048_v5 = vsub.f32 %v5713_v2, %v6032_v61 }
 0x668   :  { %v6057_v6 = vmul.f32 1.442695, %v6047_v62 }
 0x669   :  { %v6059_v15 = vmul.f32 1.442695, %v6048_v5 }
 0x66a   :  { %8875 = vpow2.f32 %v6057_v6 }
 0x66b   :  { %8877 = vpow2.f32 %v6059_v15 }
 0x66c   :  { %v8872_v16 = vpop.eup %8871 }
 0x66d   :  { %v8874_v24 = vpop.eup %8873  ;;  %v6035_v27 = vpop.xlane.xlu0 %6034  ;;  %v6069_v34 = vsel %vm2423_vm3, %v8872_v16, 0.0 }
 0x66e   :  { %v6038_v35 = vpop.xlane.xlu1 %6037  ;;  %v6049_v42 = vsub.f32 %v5789_v48, %v6035_v27  ;;  %v6072_v52 = vsel %vm2423_vm3, %v8874_v24, 0.0  ;;  %6070 = vadd.xlane.f32.xlu0 %v6069_v34 }
 0x66f   :  { %v6050_v60 = vsub.f32 %v5865_v4, %v6038_v35  ;;  %6073 = vadd.xlane.f32.xlu1 %v6072_v52 }
 0x670   :  { %v6061_v0 = vmul.f32 1.442695, %v6049_v42 }
 0x671   :  { %v6063_v29 = vmul.f32 1.442695, %v6050_v60 }
 0x672   :  { %8879 = vpow2.f32 %v6061_v0 }
 0x673   :  { %8881 = vpow2.f32 %v6063_v29 }
 0x674   :  { %v8876_v40 = vpop.eup %8875 }
 0x675   :  { %v8878_v36 = vpop.eup %8877  ;;  %v6041_v28 = vpop.xlane.xlu0 %6040  ;;  %v6075_v10 = vsel %vm2423_vm3, %v8876_v40, 0.0 }
 0x676   :  { %v6044_v47 = vpop.xlane.xlu1 %6043  ;;  %v6051_v63 = vsub.f32 %v5941_v20, %v6041_v28  ;;  %v6078_v14 = vsel %vm2423_vm3, %v8878_v36, 0.0  ;;  %6076 = vadd.xlane.f32.xlu0 %v6075_v10 }
 0x677   :  { %v6052_v11 = vsub.f32 %v6017_v25, %v6044_v47  ;;  %6079 = vadd.xlane.f32.xlu1 %v6078_v14 }
 0x678   :  { %v6065_v1 = vmul.f32 1.442695, %v6051_v63 }
 0x679   :  { %v6067_v2 = vmul.f32 1.442695, %v6052_v11 }
 0x67a   :  { %8883 = vpow2.f32 %v6065_v1 }
 0x67b   :  { %8885 = vpow2.f32 %v6067_v2 }
 0x67c   :  { %v8880_v21 = vpop.eup %8879 }
 0x67d   :  { %v8882_v3 = vpop.eup %8881  ;;  %v6081_v22 = vsel %vm2423_vm3, %v8880_v21, 0.0 }
 0x67e   :  { %v6084_v41 = vsel %vm2423_vm3, %v8882_v3, 0.0  ;;  %6082 = vadd.xlane.f32.xlu0 %v6081_v22 }
 0x67f   :  { %6085 = vadd.xlane.f32.xlu1 %v6084_v41 }
 0x684   :  { %v8884_v48 = vpop.eup %8883 }
 0x685   :  { %v8886_v4 = vpop.eup %8885  ;;  %v6087_v8 = vsel %vm2423_vm3, %v8884_v48, 0.0 }
 0x686   :  { %v6090_v12 = vsel %vm2423_vm3, %v8886_v4, 0.0  ;;  %6088 = vadd.xlane.f32.xlu0 %v6087_v8 }
 0x687   :  { %6091 = vadd.xlane.f32.xlu1 %v6090_v12 }
 0x6fb   :  { %v6071_v13 = vpop.xlane.xlu0 %6070 }
 0x6fc   :  { %v6074_v19 = vpop.xlane.xlu1 %6073  ;;  %8887 = vrcp.f32 %v6071_v13 }
 0x6fd   :  { %8889 = vrcp.f32 %v6074_v19 }
 0x703   :  { %v6077_v20 = vpop.xlane.xlu0 %6076 }
 0x704   :  { %v6080_v25 = vpop.xlane.xlu1 %6079  ;;  %8891 = vrcp.f32 %v6077_v20 }
 0x705   :  { %8893 = vrcp.f32 %v6080_v25 }
 0x706   :  { %v8888_v26 = vpop.eup %8887 }
 0x707   :  { %v8890_v31 = vpop.eup %8889  ;;  %v6101_v32 = vmul.f32 %v8888_v26, %v8872_v16 }
 0x708   :  { %v6102_v37 = vmul.f32 %v8890_v31, %v8874_v24 }
 0x709   :  { %8468 = vmatmul.mubr.msk.f32.vlgmr.msra.gmra.mrb[80].mxu0 %vm2423_vm3, %v6101_v32 }
 0x70a   :  { %8473 = vmatmul.mubr.msk.f32.vlgmr.msra.gmra.mrb[80].mxu1 %vm2423_vm3, %v6102_v37  ;;  %8476 = vmatpush3.msra.mxu0 %v10003_v45 }
 0x70b   :  { %8481 = vmatpush3.msra.mxu1 %v10005_v53  ;;  %v6083_v38 = vpop.xlane.xlu0 %6082  ;;  %8477 = vmatprep.mubr.msk.f32.mxu0 %vm8928_vm0, %v10172_v59 }
 0x70c   :  { %v6086_v43 = vpop.xlane.xlu1 %6085  ;;  %8895 = vrcp.f32 %v6083_v38  ;;  %8482 = vmatprep.mubr.msk.f32.mxu1 %vm8928_vm0, %v10172_v59  ;;  %8485 = vmatprep.subr.mxu0 %v10172_v59 }
 0x70d   :  { %8897 = vrcp.f32 %v6086_v43  ;;  %8490 = vmatprep.subr.mxu1 %v10172_v59 }
 0x70e   :  { %v8892_v44 = vpop.eup %8891 }
 0x70f   :  { %v8894_v49 = vpop.eup %8893  ;;  %v6103_v50 = vmul.f32 %v8892_v44, %v8876_v40 }
 0x710   :  { %v6104_v45 = vmul.f32 %v8894_v49, %v8878_v36 }
 0x711   :  { %8478 = vmatmul.mubr.msk.f32.vlgmr.msra.gmra.mrb[82].mxu0 %vm2423_vm3, %v6103_v50 }
 0x712   :  { %8483 = vmatmul.mubr.msk.f32.vlgmr.msra.gmra.mrb[82].mxu1 %vm2423_vm3, %v6104_v45  ;;  %8486 = vmatpush3.msra.mxu0 %v10007_v51 }
 0x713   :  { %8491 = vmatpush3.msra.mxu1 %v10009_v33  ;;  %v6089_v53 = vpop.xlane.xlu0 %6088  ;;  %8487 = vmatprep.mubr.msk.f32.mxu0 %vm8928_vm0, %v10172_v59 }
 0x714   :  { %v6092_v55 = vpop.xlane.xlu1 %6091  ;;  %8899 = vrcp.f32 %v6089_v53  ;;  %8492 = vmatprep.mubr.msk.f32.mxu1 %vm8928_vm0, %v10172_v59  ;;  %8495 = vmatprep.subr.mxu0 %v10172_v59 }
 0x715   :  { %8901 = vrcp.f32 %v6092_v55  ;;  %8500 = vmatprep.subr.mxu1 %v10172_v59 }
 0x716   :  { %v8896_v56 = vpop.eup %8895 }
 0x717   :  { %v8898_v61 = vpop.eup %8897  ;;  %v6105_v62 = vmul.f32 %v8896_v56, %v8880_v21 }
 0x718   :  { %v6106_v51 = vmul.f32 %v8898_v61, %v8882_v3 }
 0x719   :  { %8488 = vmatmul.mubr.msk.f32.vlgmr.msra.gmra.mrb[84].mxu0 %vm2423_vm3, %v6105_v62 }
 0x71a   :  { %8493 = vmatmul.mubr.msk.f32.vlgmr.msra.gmra.mrb[84].mxu1 %vm2423_vm3, %v6106_v51  ;;  %8496 = vmatpush3.msra.mxu0 %v10011_v57 }
 0x71b   :  { %8501 = vmatpush3.msra.mxu1 %v10013_v54  ;;  %8497 = vmatprep.mubr.msk.f32.mxu0 %vm8928_vm0, %v10172_v59 }
 0x71c   :  { %8502 = vmatprep.mubr.msk.f32.mxu1 %vm8928_vm0, %v10172_v59  ;;  %8505 = vmatprep.subr.mxu0 %v10172_v59 }
 0x71d   :  { %8510 = vmatprep.subr.mxu1 %v10172_v59 }
 0x71e   :  { %v8900_v33 = vpop.eup %8899 }
 0x71f   :  { %v8902_v5 = vpop.eup %8901  ;;  %v6107_v6 = vmul.f32 %v8900_v33, %v8884_v48 }
 0x720   :  { %v6108_v15 = vmul.f32 %v8902_v5, %v8886_v4 }
 0x721   :  { %8498 = vmatmul.mubr.msk.f32.vlgmr.msra.gmra.mrb[86].mxu0 %vm2423_vm3, %v6107_v6 }
 0x722   :  { %8503 = vmatmul.mubr.msk.f32.vlgmr.msra.gmra.mrb[86].mxu1 %vm2423_vm3, %v6108_v15  ;;  %8506 = vmatpush3.msk.msra.mxu0 %vm3099_vm4, %v9664_v9 }
 0x723   :  { %8507 = vmatprep.mubr.msk.f32.mxu0 %vm8928_vm0, %v10172_v59  ;;  %8511 = vmatpush3.msk.msra.mxu1 %vm3099_vm4, %v9672_v17 }
 0x724   :  { %8512 = vmatprep.mubr.msk.f32.mxu1 %vm8928_vm0, %v10172_v59  ;;  %8515 = vmatprep.subr.mxu0 %v10172_v59 }
 0x725   :  { %8520 = vmatprep.subr.mxu1 %v10172_v59 }
 0x7dc   :  { %v6178_v57 = vpop.f32.mrb[80].mxu0 }
 0x7dd   :  { %v6251_v54 = vpop.f32.mrb[80].mxu1  ;;  %v8469_v16 = vpop.f32.mrb[81].mxu0  ;;  %8508 = vmatmul.mubr.msk.f32.vlgmr.msra.gmra.mrb[88].mxu0 %vm1814_vm2, %v6178_v57 }
 0x7de   :  { %v8474_v24 = vpop.f32.mrb[81].mxu1  ;;  %8513 = vmatmul.mubr.msk.f32.vlgmr.msra.gmra.mrb[88].mxu1 %vm1814_vm2, %v6251_v54  ;;  %8516 = vmatpush3.msk.msra.mxu0 %vm3099_vm4, %v9680_v58 }
 0x7df   :  { %8517 = vmatprep.mubr.msk.f32.mxu0 %vm8928_vm0, %v10172_v59  ;;  %8521 = vmatpush3.msk.msra.mxu1 %vm3099_vm4, %v9690_v30 }
 0x7e0   :  { %8522 = vmatprep.mubr.msk.f32.mxu1 %vm8928_vm0, %v10172_v59  ;;  %8525 = vmatprep.subr.mxu0 %v10172_v59 }
 0x7e1   :  { %8530 = vmatprep.subr.mxu1 %v10172_v59 }
 0x7e4   :  { %v6324_v9 = vpop.f32.mrb[82].mxu0 }
 0x7e5   :  { %v6397_v17 = vpop.f32.mrb[82].mxu1  ;;  %v8479_v27 = vpop.f32.mrb[83].mxu0  ;;  %8518 = vmatmul.mubr.msk.f32.vlgmr.msra.gmra.mrb[90].mxu0 %vm1814_vm2, %v6324_v9 }
 0x7e6   :  { %v8484_v34 = vpop.f32.mrb[83].mxu1  ;;  %8523 = vmatmul.mubr.msk.f32.vlgmr.msra.gmra.mrb[90].mxu1 %vm1814_vm2, %v6397_v17  ;;  %8526 = vmatpush3.msk.msra.mxu0 %vm3099_vm4, %v9702_v39 }
 0x7e7   :  { %8527 = vmatprep.mubr.msk.f32.mxu0 %vm8928_vm0, %v10172_v59  ;;  %8531 = vmatpush3.msk.msra.mxu1 %vm3099_vm4, %v9712_v46 }
 0x7e8   :  { %8532 = vmatprep.mubr.msk.f32.mxu1 %vm8928_vm0, %v10172_v59  ;;  %8535 = vmatprep.subr.mxu0 %v10172_v59 }
 0x7e9   :  { %8540 = vmatprep.subr.mxu1 %v10172_v59 }
 0x7ec   :  { %v6470_v58 = vpop.f32.mrb[84].mxu0 }
 0x7ed   :  { %v6543_v30 = vpop.f32.mrb[84].mxu1  ;;  %v8489_v35 = vpop.f32.mrb[85].mxu0  ;;  %8528 = vmatmul.mubr.msk.f32.vlgmr.msra.gmra.mrb[92].mxu0 %vm1814_vm2, %v6470_v58 }
 0x7ee   :  { %v8494_v42 = vpop.f32.mrb[85].mxu1  ;;  %8533 = vmatmul.mubr.msk.f32.vlgmr.msra.gmra.mrb[92].mxu1 %vm1814_vm2, %v6543_v30  ;;  %8536 = vmatpush3.msk.msra.mxu0 %vm3099_vm4, %v9723_v18 }
 0x7ef   :  { %8537 = vmatprep.mubr.msk.f32.mxu0 %vm8928_vm0, %v10172_v59  ;;  %8541 = vmatpush3.msk.msra.mxu1 %vm3099_vm4, %v9729_v7 }
 0x7f0   :  { %8542 = vmatprep.mubr.msk.f32.mxu1 %vm8928_vm0, %v10172_v59 }
 0x7f4   :  { %v6616_v39 = vpop.f32.mrb[86].mxu0 }
 0x7f5   :  { %v6689_v46 = vpop.f32.mrb[86].mxu1  ;;  %v8499_v52 = vpop.f32.mrb[87].mxu0  ;;  %8538 = vmatmul.mubr.msk.f32.vlgmr.msra.gmra.mrb[94].mxu0 %vm1814_vm2, %v6616_v39 }
 0x7f6   :  { %v8504_v60 = vpop.f32.mrb[87].mxu1  ;;  %8543 = vmatmul.mubr.msk.f32.vlgmr.msra.gmra.mrb[94].mxu1 %vm1814_vm2, %v6689_v46 }
 0x8b0   :  { %v6762_v0 = vpop.f32.mrb[88].mxu0 }
 0x8b1   :  { %v7277_v18 = vsel %vm130_vm1, %v6762_v0, 0.0  ;;  %v6835_v29 = vpop.f32.mrb[88].mxu1  ;;  %v8509_v40 = vpop.f32.mrb[89].mxu0 }
 0x8b2   :  { %v7278_v36 = vsel %vm130_vm1, %v6835_v29, 0.0  ;;  %v8514_v28 = vpop.f32.mrb[89].mxu1 }
 0x8b3   :  { %v7279_v7 = vadd.f32 %v7278_v36, %v7277_v18 }
 0x8b8   :  { %v6908_v10 = vpop.f32.mrb[90].mxu0 }
 0x8b9   :  { %v7280_v59 = vsel %vm130_vm1, %v6908_v10, 0.0  ;;  %v6981_v47 = vpop.f32.mrb[90].mxu1  ;;  %v8519_v63 = vpop.f32.mrb[91].mxu0 }
 0x8ba   :  { %v7281_v14 = vadd.f32 %v7280_v59, %v7279_v7  ;;  %v8524_v11 = vpop.f32.mrb[91].mxu1  ;;  %v7282_v1 = vsel %vm130_vm1, %v6981_v47, 0.0 }
 0x8bc   :  { %v7283_v2 = vadd.f32 %v7282_v1, %v7281_v14 }
 0x8c0   :  { %v7054_v21 = vpop.f32.mrb[92].mxu0 }
 0x8c1   :  { %v7284_v3 = vsel %vm130_vm1, %v7054_v21, 0.0  ;;  %v7127_v22 = vpop.f32.mrb[92].mxu1  ;;  %v8529_v41 = vpop.f32.mrb[93].mxu0 }
 0x8c2   :  { %v7285_v48 = vadd.f32 %v7284_v3, %v7283_v2  ;;  %v8534_v4 = vpop.f32.mrb[93].mxu1  ;;  %v7286_v8 = vsel %vm130_vm1, %v7127_v22, 0.0 }
 0x8c4   :  { %v7287_v12 = vadd.f32 %v7286_v8, %v7285_v48 }
 0x8c8   :  { %v7200_v13 = vpop.f32.mrb[94].mxu0 }
 0x8c9   :  { %v7288_v19 = vsel %vm130_vm1, %v7200_v13, 0.0  ;;  %v7273_v20 = vpop.f32.mrb[94].mxu1  ;;  %v8539_v25 = vpop.f32.mrb[95].mxu0 }
 0x8ca   :  { %v7289_v26 = vadd.f32 %v7288_v19, %v7287_v12  ;;  %v8544_v31 = vpop.f32.mrb[95].mxu1  ;;  %v7290_v32 = vsel %vm130_vm1, %v7273_v20, 0.0 }
 0x8cc   :  { %v7291_v37 = vadd.f32 %v7290_v32, %v7289_v26 }
 0x8ce   :  { %v7292_v38 = vadd.f32 %v9956_v23, %v7291_v37 }
 0x8d0   :  { %7294 = vst.msk [vmem:[#allocation2 + $0x8] sm:$0xff] %vm130_vm1, %v7292_v38 }
 0x8d1   :  { %8914 = shalt.err (!%p8911_p4)
}
 0x8d2   :  { %s8915_s10 = scalar_lea.hbm %s10137_s6, 256 }
 0x8d3   :  { %p8916_p5 = scmp.ne.s32.totalorder %s10137_s6, %s8915_s10  ;;  %p8919_p6 = scmp.lt.u32.totalorder %s8915_s10, %s10137_s6 }
 0x8d5   :  { %p8921_p7 = pnand %p8919_p6, %p8916_p5 }
 0x8d7   :  { %8924 = shalt.err (!%p8921_p7)
}
 0x8d8   :  { %s8931_s3 = smov 128   ;;  %s8932_s15 = smov 8  }
 0x8d9   :  { %7306 = dma.vmem_to_hbm [thread:$0]  %s7301_s30, 256, %s10137_s6, [#allocation3], %s8931_s3, %s8931_s3, %s8932_s15  }
 0x8da   :  { %8925 = dma.done.wait [#allocation3], 256  }
 0x8db   :  { %8926 = vsyncadd [#allocation3], 4294967040 }
 0x8dc   :  { %7310 = vsyncpa [#allocation3], 1 }

</bundles_post_ra>
